<compile_context>
chip_gen: v7x
topology: tpu7x:2x2x1
jax: 0.10.0
libtpu: 0.0.40
codegen_flags: <defaults>
</compile_context>

<pallas_src>
import math
import jax
import jax.numpy as jnp
from jax import lax
from jax.experimental import pallas as pl
from jax.experimental.pallas import tpu as pltpu


_SCAN_UNROLL = 8  # timesteps per register-resident scan block (multiple of 8 -> dense stores)


def _round_up(a, m):
    return ((a + m - 1) // m) * m


def _vmem_limit_bytes():
    # Generation-aware scoped-VMEM budget: ~3/4 of physical VMEM, capped at 96 MiB
    # (v5e/v6e have 128 MiB, v7x only 64 MiB).  Falls back to a conservative 48 MiB.
    try:
        info = pltpu.get_tpu_info()
        cap = getattr(info, "vmem_capacity_bytes", None)
        if cap:
            return int(min(cap * 3 // 4, 96 * 1024 * 1024))
    except Exception:
        pass
    return 48 * 1024 * 1024


# ----------------------------------------------------------------------------
# Fused residual Mamba block kernel (one (b, L-chunk) grid step per invocation)
# ----------------------------------------------------------------------------
def mamba_layer_kernel(
    x_ref,      # (1, TL, D)  f32  residual-stream chunk
    nw_ref,     # (1, D)      f32  RMSNorm weight
    inx_ref,    # (D, E)      bf16 in_proj (x half)
    inz_ref,    # (D, E)      bf16 in_proj (gate half)
    cw_ref,     # (K, E)      f32  depthwise conv weight (tap-major)
    cb_ref,     # (1, E)      f32  conv bias
    xpdt_ref,   # (E, R)      bf16 x_proj -> dt
    xpbcT_ref,  # (2N, E)     bf16 x_proj -> [B;C], fused and pre-transposed
    dtw_ref,    # (R, E)      f32  dt_proj weight
    dtb_ref,    # (1, E)      f32  dt_proj bias
    aneg_ref,   # (N, E)      f32  A = -exp(A_log), pre-negated at init, transposed
    dpar_ref,   # (1, E)      f32  D (skip) parameter
    outw_ref,   # (E, D)      bf16 out_proj
    o_ref,      # (1, TL, D)  f32  output chunk
    h_scr,      # VMEM (N, E)       scan state, carried across L chunks
    hist_scr,   # VMEM (K-1, E)     conv history, carried across L chunks
    conv_scr,   # VMEM (TL+K-1, E)  chunk-local padded conv input
    d_scr,      # VMEM (TL, E)      delta
    xc_scr,     # VMEM (TL, E)      conv output (after silu)
    y_scr,      # VMEM (TL, E)      scan outputs
):
    l = pl.program_id(1)
    TL = x_ref.shape[1]
    K = cw_ref.shape[0]
    Km1 = K - 1
    N, E = aneg_ref.shape

    # Reset carried state at the start of each sequence (for every batch element).
    @pl.when(l == 0)
    def _():
        h_scr[...] = jnp.zeros_like(h_scr)
        hist_scr[...] = jnp.zeros_like(hist_scr)

    x = x_ref[0]                                          # (TL, D) f32

    # ---- RMSNorm (eps = 1e-5, matches reference) ----
    var = jnp.mean(x * x, axis=-1, keepdims=True)
    xn = (x * lax.rsqrt(var + 1e-5) * nw_ref[...]).astype(jnp.bfloat16)

    # ---- in_proj as two lane-aligned bf16 matmuls ----
    xl = jnp.dot(xn, inx_ref[...], preferred_element_type=jnp.float32)    # (TL, E)
    res = jnp.dot(xn, inz_ref[...], preferred_element_type=jnp.float32)   # (TL, E)

    # ---- causal depthwise conv1d with K-1 input history carried across chunks ----
    conv_scr[0:Km1, :] = hist_scr[...]
    conv_scr[Km1:Km1 + TL, :] = xl
    hist_scr[...] = conv_scr[TL:TL + Km1, :]              # history for next chunk
    cw = cw_ref[...]
    acc = jnp.broadcast_to(cb_ref[...], (TL, E))
    for k in range(K):                                    # K is tiny (4): static unroll
        acc = acc + cw[k:k + 1, :] * conv_scr[k:k + TL, :]
    xc = jax.nn.silu(acc)                                 # (TL, E) f32
    xc_scr[...] = xc

    # ---- dt path: x_proj(dt slice) then dt_proj, both on the MXU ----
    xcb = xc.astype(jnp.bfloat16)
    dt_in = jnp.dot(xcb, xpdt_ref[...], preferred_element_type=jnp.float32)  # (TL, R)
    delta = jax.nn.softplus(
        jnp.dot(dt_in, dtw_ref[...], preferred_element_type=jnp.float32)
        + dtb_ref[...])                                   # (TL, E) f32
    d_scr[...] = delta

    A = aneg_ref[...]                                     # (N, E) f32, already -exp(A_log)
    w_bcT = xpbcT_ref[...]                                # (2N, E) bf16, loop-invariant
    h0 = h_scr[...]                                       # (N, E) -> carried in vregs below
    n_blk = TL // _SCAN_UNROLL

    # ---- selective scan: h carried as a fori_loop value; 8 steps per block ----
    def scan_block(blk, h):
        base = pl.multiple_of(blk * _SCAN_UNROLL, _SCAN_UNROLL)
        d_blk = d_scr[pl.ds(base, _SCAN_UNROLL), :]       # (8, E)
        xc_blk = xc_scr[pl.ds(base, _SCAN_UNROLL), :]     # (8, E)
        du_blk = d_blk * xc_blk                           # (8, E)  delta * u
        # One small A@B^T-form matmul per 8 steps produces the B/C columns already
        # with N on sublanes (no per-step transpose, no per-step 1-row MXU dot).
        bcT_blk = lax.dot_general(
            w_bcT, xc_blk.astype(jnp.bfloat16),
            (((1,), (1,)), ((), ())),
            preferred_element_type=jnp.float32)           # (2N, 8)
        ys = []
        for i in range(_SCAN_UNROLL):                     # static unroll: ILP across steps
            dt_i = d_blk[i:i + 1, :]                      # (1, E)
            du_i = du_blk[i:i + 1, :]                     # (1, E)
            b_col = bcT_blk[0:N, i:i + 1]                 # (N, 1)
            c_col = bcT_blk[N:2 * N, i:i + 1]             # (N, 1)
            dA = jnp.exp(dt_i * A)                        # (N, E)  EUP
            h = dA * h + b_col * du_i                     # (N, E)  VPU broadcast-FMA
            ys.append(jnp.sum(c_col * h, axis=0, keepdims=True))  # (1, E) XLU reduce
        # Dense 8-row store instead of TL masked 1-row stores.
        y_scr[pl.ds(base, _SCAN_UNROLL), :] = jnp.concatenate(ys, axis=0)
        return h

    # TODO(synk): a blocked/SSD-style reformulation would move the recurrence onto
    # the MXU entirely; left for a follow-up version.
    h = lax.fori_loop(0, n_blk, scan_block, h0)
    h_scr[...] = h

    # ---- skip term, gate, out_proj, residual add ----
    y = y_scr[...] + xc_scr[...] * dpar_ref[...]          # (TL, E)
    gated = (y * jax.nn.silu(res)).astype(jnp.bfloat16)
    out = jnp.dot(gated, outw_ref[...], preferred_element_type=jnp.float32)  # (TL, D)
    o_ref[0] = x + out


def mamba_layer(x, p, seq_tile):
    B, L, D = x.shape
    N, E = p["A_neg_T"].shape
    K = p["conv_w"].shape[0]
    TL = seq_tile
    assert L % TL == 0 and TL % _SCAN_UNROLL == 0, (L, TL)
    grid = (B, L // TL)

    def _resident(a):
        return pl.BlockSpec(a.shape, lambda b, l, _nd=a.ndim: (0,) * _nd)

    args = (x, p["norm_w"], p["in_proj_x"], p["in_proj_z"], p["conv_w"],
            p["conv_b"], p["x_proj_dt"], p["x_proj_BC_T"], p["dt_proj_w"],
            p["dt_proj_b"], p["A_neg_T"], p["D"], p["out_proj"])
    in_specs = [pl.BlockSpec((1, TL, D), lambda b, l: (b, l, 0))]
    # TODO(synk): for production d_model (E >= 4096) stream in_proj/out_proj column
    # blocks from HBM (extra grid axis / single-buffered specs) instead of keeping
    # them fully VMEM-resident; at these shapes resident weights are optimal.
    in_specs += [_resident(a) for a in args[1:]]
    out_specs = pl.BlockSpec((1, TL, D), lambda b, l: (b, l, 0))

    return pl.pallas_call(
        mamba_layer_kernel,
        out_shape=jax.ShapeDtypeStruct((B, L, D), jnp.float32),
        grid=grid,
        in_specs=in_specs,
        out_specs=out_specs,
        scratch_shapes=[
            pltpu.VMEM((N, E), jnp.float32),           # h state (carried)
            pltpu.VMEM((K - 1, E), jnp.float32),       # conv history (carried)
            pltpu.VMEM((TL + K - 1, E), jnp.float32),  # chunk conv input
            pltpu.VMEM((TL, E), jnp.float32),          # delta
            pltpu.VMEM((TL, E), jnp.float32),          # conv output (silu'd)
            pltpu.VMEM((TL, E), jnp.float32),          # scan outputs y
        ],
        compiler_params=pltpu.CompilerParams(
            # Batch axis "parallel": on v7x keep B >= 2 so both TensorCores are busy.
            dimension_semantics=("parallel", "arbitrary"),
            vmem_limit_bytes=_vmem_limit_bytes(),
        ),
    )(*args)


# ----------------------------------------------------------------------------
# Final RMSNorm + lm_head kernel, tiled over (row-block, vocab-block)
# ----------------------------------------------------------------------------
def head_kernel(x_ref, nw_ref, lmw_ref, o_ref):
    x = x_ref[...]                                        # (TM, D) f32
    var = jnp.mean(x * x, axis=-1, keepdims=True)
    xn = (x * lax.rsqrt(var + 1e-5) * nw_ref[...]).astype(jnp.bfloat16)
    o_ref[...] = jnp.dot(xn, lmw_ref[...],
                         preferred_element_type=jnp.float32).astype(o_ref.dtype)


def norm_and_head(x, norm_w, lm_w, row_tile=256, vocab_tile=512,
                  logits_dtype=jnp.float32):
    # logits_dtype=jnp.bfloat16 halves the dominant (BL, V) writeback if allowed.
    B, L, D = x.shape
    V = lm_w.shape[1]
    BL = B * L
    x2 = x.reshape(BL, D)
    tm = BL if BL <= row_tile else row_tile        # row_tile multiple of 8
    tn = V if V <= vocab_tile else vocab_tile      # vocab_tile multiple of 128
    grid = (pl.cdiv(BL, tm), pl.cdiv(V, tn))

    out2 = pl.pallas_call(
        head_kernel,
        out_shape=jax.ShapeDtypeStruct((BL, V), logits_dtype),
        grid=grid,
        in_specs=[
            pl.BlockSpec((tm, D), lambda i, j: (i, 0)),
            pl.BlockSpec((1, D), lambda i, j: (0, 0)),
            pl.BlockSpec((D, tn), lambda i, j: (0, j)),
        ],
        out_specs=pl.BlockSpec((tm, tn), lambda i, j: (i, j)),
        compiler_params=pltpu.CompilerParams(
            dimension_semantics=("parallel", "parallel"),
            vmem_limit_bytes=_vmem_limit_bytes(),
        ),
    )(x2, norm_w, lm_w)
    return out2.reshape(B, L, V)


# ----------------------------------------------------------------------------
# Full model
# ----------------------------------------------------------------------------
def _pick_seq_tile(L, requested=None):
    tl = 256 if requested is None else requested   # 256 fills the 256x256 MXU on v6e/v7x
    tl = max(_SCAN_UNROLL, (tl // _SCAN_UNROLL) * _SCAN_UNROLL)
    tl = min(tl, _round_up(L, _SCAN_UNROLL))
    return tl


def mamba_forward(token_ids, params, seq_tile=None):
    # Embedding lookup (gather) kept in plain JAX.
    x = params["embedding"][token_ids]                    # (B, L, D) f32
    B, L, D = x.shape
    TL = _pick_seq_tile(L, seq_tile)
    Lp = _round_up(L, TL)
    if Lp != L:
        # Pad the sequence once for all layers; the scan/conv are causal so zero
        # padding at the end is inert, and padded rows stay exactly zero.
        x = jnp.pad(x, ((0, 0), (0, Lp - L), (0, 0)))
    for lp in params["layers"]:
        x = mamba_layer(x, lp, TL)
    if Lp != L:
        x = x[:, :L, :]
    return norm_and_head(x, params["norm_f_w"], params["lm_head_T"])


# ----------------------------------------------------------------------------
# Deterministic parameter initialization (synthetic, no checkpoint)
# ----------------------------------------------------------------------------
def init_params(key, vocab, d_model, n_layer, d_state, d_conv, expand):
    d_inner = expand * d_model
    dt_rank = math.ceil(d_model / 16)
    keys = jax.random.split(key, 1 + n_layer)

    emb = 0.02 * jax.random.normal(keys[0], (vocab, d_model), jnp.float32)

    layers = []
    for li in range(n_layer):
        ks = jax.random.split(keys[1 + li], 8)
        s_in = 1.0 / math.sqrt(d_model)
        s_e = 1.0 / math.sqrt(d_inner)
        in_proj = s_in * jax.random.normal(ks[0], (d_model, 2 * d_inner), jnp.float32)
        x_proj = s_e * jax.random.normal(ks[3], (d_inner, dt_rank + 2 * d_state), jnp.float32)
        layer = {
            "norm_w": jnp.ones((1, d_model), jnp.float32),
            "in_proj_x": in_proj[:, :d_inner].astype(jnp.bfloat16),
            "in_proj_z": in_proj[:, d_inner:].astype(jnp.bfloat16),
            "conv_w": 0.1 * jax.random.normal(ks[1], (d_conv, d_inner), jnp.float32),
            "conv_b": 0.01 * jax.random.normal(ks[2], (1, d_inner), jnp.float32),
            "x_proj_dt": x_proj[:, :dt_rank].astype(jnp.bfloat16),
            # B/C halves of x_proj fused and pre-transposed to (2N, E) so the scan
            # produces B^T/C^T per 8-step block with one small A@B^T matmul.
            "x_proj_BC_T": jnp.transpose(x_proj[:, dt_rank:]).astype(jnp.bfloat16),
            "dt_proj_w": (1.0 / math.sqrt(dt_rank)) *
                         jax.random.normal(ks[4], (dt_rank, d_inner), jnp.float32),
            "dt_proj_b": 0.01 * jax.random.normal(ks[5], (1, d_inner), jnp.float32),
            # A = -exp(A_log) precomputed at init, stored transposed (N, E) so the
            # scan keeps E on the lane axis.
            "A_neg_T": -jnp.broadcast_to(
                jnp.arange(1, d_state + 1, dtype=jnp.float32)[:, None],
                (d_state, d_inner)),
            "D": jnp.ones((1, d_inner), jnp.float32),
            "out_proj": (s_e * jax.random.normal(ks[6], (d_inner, d_model),
                                                 jnp.float32)).astype(jnp.bfloat16),
        }
        layers.append(layer)

    return {
        "embedding": emb,
        "layers": layers,
        "norm_f_w": jnp.ones((1, d_model), jnp.float32),
        "lm_head_T": emb.T.astype(jnp.bfloat16),   # weight tying, as in reference
    }


if __name__ == "__main__":
    VOCAB, D_MODEL, N_LAYER = 512, 32, 2
    D_STATE, D_CONV, EXPAND = 16, 4, 2
    B, L = 2, 24   # L=24 with seq_tile=16 -> padded to 32, 2 chunks: exercises the
                   # carried scan/conv state, the 8-step scan blocks, and padding.

    key = jax.random.PRNGKey(0)
    kp, kt = jax.random.split(key)
    params = init_params(kp, VOCAB, D_MODEL, N_LAYER, D_STATE, D_CONV, EXPAND)
    token_ids = jax.random.randint(kt, (B, L), 0, VOCAB, dtype=jnp.int32)

    fwd = jax.jit(lambda tok: mamba_forward(tok, params, seq_tile=16))
    logits = jax.block_until_ready(fwd(token_ids))

    assert logits.shape == (B, L, VOCAB), logits.shape
    assert bool(jnp.all(jnp.isfinite(logits)))
    print("KERNEL_OK")
</pallas_src>

<mosaic_0001>
module attributes {stable_mosaic.version = 11 : i64} {
  func.func @head_kernel(%arg0: i32, %arg1: i32, %arg2: memref<48x32xf32, #tpu.memory_space<vmem>>, %arg3: memref<1x32xf32, #tpu.memory_space<vmem>>, %arg4: memref<32x512xbf16, #tpu.memory_space<vmem>>, %arg5: memref<48x512xf32, #tpu.memory_space<vmem>>) attributes {dimension_semantics = [#tpu.dimension_semantics<parallel>, #tpu.dimension_semantics<parallel>], iteration_bounds = array<i64: 1, 1>, scalar_prefetch = 0 : i64, scratch_operands = 0 : i64, tpu.core_type = #tpu.core_type<tc>, window_params = [{transform_indices = @transform_0, window_bounds = array<i64: 48, 32>}, {pipeline_mode = #tpu.pipeline_mode<synchronous>, transform_indices = @transform_1, window_bounds = array<i64: 1, 32>}, {transform_indices = @transform_2, window_bounds = array<i64: 32, 512>}, {transform_indices = @transform_3, window_bounds = array<i64: 48, 512>}]} {
    %c0 = arith.constant 0 : index
    %c0_0 = arith.constant 0 : index
    %0 = vector.load %arg2[%c0, %c0_0] : memref<48x32xf32, #tpu.memory_space<vmem>>, vector<48x32xf32>
    %1 = arith.mulf %0, %0 : vector<48x32xf32>
    %cst = arith.constant dense<0.000000e+00> : vector<48xf32>
    %2 = vector.multi_reduction <add>, %1, %cst [1] : vector<48x32xf32> to vector<48xf32>
    %3 = vector.shape_cast %2 : vector<48xf32> to vector<48x1xf32>
    %cst_1 = arith.constant 3.200000e+01 : f32
    %4 = vector.broadcast %cst_1 : f32 to vector<48x1xf32>
    %5 = arith.divf %3, %4 : vector<48x1xf32>
    %cst_2 = arith.constant 9.99999974E-6 : f32
    %6 = vector.broadcast %cst_2 : f32 to vector<48x1xf32>
    %7 = arith.addf %5, %6 : vector<48x1xf32>
    %8 = math.rsqrt %7 : vector<48x1xf32>
    %9 = vector.broadcast %8 : vector<48x1xf32> to vector<48x32xf32>
    %10 = arith.mulf %0, %9 : vector<48x32xf32>
    %c0_3 = arith.constant 0 : index
    %c0_4 = arith.constant 0 : index
    %11 = vector.load %arg3[%c0_3, %c0_4] : memref<1x32xf32, #tpu.memory_space<vmem>>, vector<1x32xf32>
    %12 = vector.broadcast %11 : vector<1x32xf32> to vector<48x32xf32>
    %13 = arith.mulf %10, %12 : vector<48x32xf32>
    %14 = arith.truncf %13 : vector<48x32xf32> to vector<48x32xbf16>
    %c0_5 = arith.constant 0 : index
    %c0_6 = arith.constant 0 : index
    %15 = vector.load %arg4[%c0_5, %c0_6] : memref<32x512xbf16, #tpu.memory_space<vmem>>, vector<32x512xbf16>
    %cst_7 = arith.constant dense<0.000000e+00> : vector<48x512xf32>
    %16 = tpu.matmul %14, %15, %cst_7 {dimension_numbers = #tpu.dot_dimension_numbers<[1], [0], [0], [1], [0, 0, 1, 1], [], []>} : vector<48x32xbf16>, vector<32x512xbf16>, vector<48x512xf32> -> vector<48x512xf32>
    %c0_8 = arith.constant 0 : index
    %c0_9 = arith.constant 0 : index
    %17 = vector.load %arg5[%c0_8, %c0_9] : memref<48x512xf32, #tpu.memory_space<vmem>>, vector<48x512xf32>
    tpu.vector_store %arg5[%c0_8, %c0_9], %16 {strides = array<i32>} : memref<48x512xf32, #tpu.memory_space<vmem>>, vector<48x512xf32>,
    return
  }
  func.func @transform_0(%arg0: i32, %arg1: i32) -> (i32, i32) {
    %c0_i32 = arith.constant 0 : i32
    %c0_i32_0 = arith.constant 0 : i32
    return %arg0, %c0_i32 : i32, i32
  }
  func.func @transform_1(%arg0: i32, %arg1: i32) -> (i32, i32) {
    %c0_i32 = arith.constant 0 : i32
    %c0_i32_0 = arith.constant 0 : i32
    %c0_i32_1 = arith.constant 0 : i32
    return %c0_i32, %c0_i32_0 : i32, i32
  }
  func.func @transform_2(%arg0: i32, %arg1: i32) -> (i32, i32) {
    %c0_i32 = arith.constant 0 : i32
    %c0_i32_0 = arith.constant 0 : i32
    return %c0_i32, %arg1 : i32, i32
  }
  func.func @transform_3(%arg0: i32, %arg1: i32) -> (i32, i32) {
    %c0_i32 = arith.constant 0 : i32
    return %arg0, %arg1 : i32, i32
  }
}

module attributes {stable_mosaic.version = 11 : i64} {
  func.func @mamba_layer_kernel(%arg0: i32, %arg1: i32, %arg2: memref<1x16x32xf32, #tpu.memory_space<vmem>>, %arg3: memref<1x32xf32, #tpu.memory_space<vmem>>, %arg4: memref<32x64xbf16, #tpu.memory_space<vmem>>, %arg5: memref<32x64xbf16, #tpu.memory_space<vmem>>, %arg6: memref<4x64xf32, #tpu.memory_space<vmem>>, %arg7: memref<1x64xf32, #tpu.memory_space<vmem>>, %arg8: memref<64x2xbf16, #tpu.memory_space<vmem>>, %arg9: memref<32x64xbf16, #tpu.memory_space<vmem>>, %arg10: memref<2x64xf32, #tpu.memory_space<vmem>>, %arg11: memref<1x64xf32, #tpu.memory_space<vmem>>, %arg12: memref<16x64xf32, #tpu.memory_space<vmem>>, %arg13: memref<1x64xf32, #tpu.memory_space<vmem>>, %arg14: memref<64x32xbf16, #tpu.memory_space<vmem>>, %arg15: memref<1x16x32xf32, #tpu.memory_space<vmem>>, %arg16: memref<16x64xf32, #tpu.memory_space<vmem>>, %arg17: memref<3x64xf32, #tpu.memory_space<vmem>>, %arg18: memref<19x64xf32, #tpu.memory_space<vmem>>, %arg19: memref<16x64xf32, #tpu.memory_space<vmem>>, %arg20: memref<16x64xf32, #tpu.memory_space<vmem>>, %arg21: memref<16x64xf32, #tpu.memory_space<vmem>>) attributes {dimension_semantics = [#tpu.dimension_semantics<parallel>, #tpu.dimension_semantics<arbitrary>], iteration_bounds = array<i64: 2, 2>, scalar_prefetch = 0 : i64, scratch_operands = 6 : i64, tpu.core_type = #tpu.core_type<tc>, window_params = [{transform_indices = @transform_0, window_bounds = array<i64: 1, 16, 32>}, {pipeline_mode = #tpu.pipeline_mode<synchronous>, transform_indices = @transform_1, window_bounds = array<i64: 1, 32>}, {pipeline_mode = #tpu.pipeline_mode<synchronous>, transform_indices = @transform_2, window_bounds = array<i64: 32, 64>}, {pipeline_mode = #tpu.pipeline_mode<synchronous>, transform_indices = @transform_3, window_bounds = array<i64: 32, 64>}, {pipeline_mode = #tpu.pipeline_mode<synchronous>, transform_indices = @transform_4, window_bounds = array<i64: 4, 64>}, {pipeline_mode = #tpu.pipeline_mode<synchronous>, transform_indices = @transform_5, window_bounds = array<i64: 1, 64>}, {pipeline_mode = #tpu.pipeline_mode<synchronous>, transform_indices = @transform_6, window_bounds = array<i64: 64, 2>}, {pipeline_mode = #tpu.pipeline_mode<synchronous>, transform_indices = @transform_7, window_bounds = array<i64: 32, 64>}, {pipeline_mode = #tpu.pipeline_mode<synchronous>, transform_indices = @transform_8, window_bounds = array<i64: 2, 64>}, {pipeline_mode = #tpu.pipeline_mode<synchronous>, transform_indices = @transform_9, window_bounds = array<i64: 1, 64>}, {pipeline_mode = #tpu.pipeline_mode<synchronous>, transform_indices = @transform_10, window_bounds = array<i64: 16, 64>}, {pipeline_mode = #tpu.pipeline_mode<synchronous>, transform_indices = @transform_11, window_bounds = array<i64: 1, 64>}, {pipeline_mode = #tpu.pipeline_mode<synchronous>, transform_indices = @transform_12, window_bounds = array<i64: 64, 32>}, {transform_indices = @transform_13, window_bounds = array<i64: 1, 16, 32>}]} {
    %c0_i32 = arith.constant 0 : i32
    %0 = arith.cmpi eq, %arg1, %c0_i32 : i32
    %1 = arith.extui %0 : i1 to i32
    %c0_i32_0 = arith.constant 0 : i32
    %2 = arith.cmpi ne, %1, %c0_i32_0 : i32
    scf.if %2 {
      %cst_69 = arith.constant 0.000000e+00 : f32
      %108 = vector.broadcast %cst_69 : f32 to vector<16x64xf32>
      %c0_70 = arith.constant 0 : index
      %c0_71 = arith.constant 0 : index
      %109 = vector.load %arg16[%c0_70, %c0_71] : memref<16x64xf32, #tpu.memory_space<vmem>>, vector<16x64xf32>
      tpu.vector_store %arg16[%c0_70, %c0_71], %108 {strides = array<i32>} : memref<16x64xf32, #tpu.memory_space<vmem>>, vector<16x64xf32>,
      %cst_72 = arith.constant 0.000000e+00 : f32
      %110 = vector.broadcast %cst_72 : f32 to vector<3x64xf32>
      %c0_73 = arith.constant 0 : index
      %c0_74 = arith.constant 0 : index
      %111 = vector.load %arg17[%c0_73, %c0_74] : memref<3x64xf32, #tpu.memory_space<vmem>>, vector<3x64xf32>
      tpu.vector_store %arg17[%c0_73, %c0_74], %110 {strides = array<i32>} : memref<3x64xf32, #tpu.memory_space<vmem>>, vector<3x64xf32>,
    } else {
    }
    %c0 = arith.constant 0 : index
    %c0_1 = arith.constant 0 : index
    %c0_2 = arith.constant 0 : index
    %3 = vector.load %arg2[%c0, %c0_1, %c0_2] : memref<1x16x32xf32, #tpu.memory_space<vmem>>, vector<1x16x32xf32>
    %4 = vector.shape_cast %3 : vector<1x16x32xf32> to vector<16x32xf32>
    %5 = arith.mulf %4, %4 : vector<16x32xf32>
    %cst = arith.constant dense<0.000000e+00> : vector<16xf32>
    %6 = vector.multi_reduction <add>, %5, %cst [1] : vector<16x32xf32> to vector<16xf32>
    %7 = vector.shape_cast %6 : vector<16xf32> to vector<16x1xf32>
    %cst_3 = arith.constant 3.200000e+01 : f32
    %8 = vector.broadcast %cst_3 : f32 to vector<16x1xf32>
    %9 = arith.divf %7, %8 : vector<16x1xf32>
    %cst_4 = arith.constant 9.99999974E-6 : f32
    %10 = vector.broadcast %cst_4 : f32 to vector<16x1xf32>
    %11 = arith.addf %9, %10 : vector<16x1xf32>
    %12 = math.rsqrt %11 : vector<16x1xf32>
    %13 = vector.broadcast %12 : vector<16x1xf32> to vector<16x32xf32>
    %14 = arith.mulf %4, %13 : vector<16x32xf32>
    %c0_5 = arith.constant 0 : index
    %c0_6 = arith.constant 0 : index
    %15 = vector.load %arg3[%c0_5, %c0_6] : memref<1x32xf32, #tpu.memory_space<vmem>>, vector<1x32xf32>
    %16 = vector.broadcast %15 : vector<1x32xf32> to vector<16x32xf32>
    %17 = arith.mulf %14, %16 : vector<16x32xf32>
    %18 = arith.truncf %17 : vector<16x32xf32> to vector<16x32xbf16>
    %c0_7 = arith.constant 0 : index
    %c0_8 = arith.constant 0 : index
    %19 = vector.load %arg4[%c0_7, %c0_8] : memref<32x64xbf16, #tpu.memory_space<vmem>>, vector<32x64xbf16>
    %cst_9 = arith.constant dense<0.000000e+00> : vector<16x64xf32>
    %20 = tpu.matmul %18, %19, %cst_9 {dimension_numbers = #tpu.dot_dimension_numbers<[1], [0], [0], [1], [0, 0, 1, 1], [], []>} : vector<16x32xbf16>, vector<32x64xbf16>, vector<16x64xf32> -> vector<16x64xf32>
    %c0_10 = arith.constant 0 : index
    %c0_11 = arith.constant 0 : index
    %21 = vector.load %arg5[%c0_10, %c0_11] : memref<32x64xbf16, #tpu.memory_space<vmem>>, vector<32x64xbf16>
    %cst_12 = arith.constant dense<0.000000e+00> : vector<16x64xf32>
    %22 = tpu.matmul %18, %21, %cst_12 {dimension_numbers = #tpu.dot_dimension_numbers<[1], [0], [0], [1], [0, 0, 1, 1], [], []>} : vector<16x32xbf16>, vector<32x64xbf16>, vector<16x64xf32> -> vector<16x64xf32>
    %c0_13 = arith.constant 0 : index
    %c0_14 = arith.constant 0 : index
    %23 = vector.load %arg17[%c0_13, %c0_14] : memref<3x64xf32, #tpu.memory_space<vmem>>, vector<3x64xf32>
    %c0_15 = arith.constant 0 : index
    %c0_16 = arith.constant 0 : index
    %24 = vector.load %arg18[%c0_15, %c0_16] : memref<19x64xf32, #tpu.memory_space<vmem>>, vector<3x64xf32>
    tpu.vector_store %arg18[%c0_15, %c0_16], %23 {strides = array<i32>} : memref<19x64xf32, #tpu.memory_space<vmem>>, vector<3x64xf32>,
    %c3 = arith.constant 3 : index
    %c0_17 = arith.constant 0 : index
    %25 = vector.load %arg18[%c3, %c0_17] : memref<19x64xf32, #tpu.memory_space<vmem>>, vector<16x64xf32>
    tpu.vector_store %arg18[%c3, %c0_17], %20 {strides = array<i32>} : memref<19x64xf32, #tpu.memory_space<vmem>>, vector<16x64xf32>,
    %c16 = arith.constant 16 : index
    %c0_18 = arith.constant 0 : index
    %26 = vector.load %arg18[%c16, %c0_18] : memref<19x64xf32, #tpu.memory_space<vmem>>, vector<3x64xf32>
    %c0_19 = arith.constant 0 : index
    %c0_20 = arith.constant 0 : index
    %27 = vector.load %arg17[%c0_19, %c0_20] : memref<3x64xf32, #tpu.memory_space<vmem>>, vector<3x64xf32>
    tpu.vector_store %arg17[%c0_19, %c0_20], %26 {strides = array<i32>} : memref<3x64xf32, #tpu.memory_space<vmem>>, vector<3x64xf32>,
    %c0_21 = arith.constant 0 : index
    %c0_22 = arith.constant 0 : index
    %28 = vector.load %arg6[%c0_21, %c0_22] : memref<4x64xf32, #tpu.memory_space<vmem>>, vector<4x64xf32>
    %c0_23 = arith.constant 0 : index
    %c0_24 = arith.constant 0 : index
    %29 = vector.load %arg7[%c0_23, %c0_24] : memref<1x64xf32, #tpu.memory_space<vmem>>, vector<1x64xf32>
    %30 = vector.shape_cast %29 : vector<1x64xf32> to vector<1x64xf32>
    %31 = vector.broadcast %30 : vector<1x64xf32> to vector<16x64xf32>
    %32 = vector.extract_strided_slice %28 {offsets = [0, 0], sizes = [1, 64], strides = [1, 1]} : vector<4x64xf32> to vector<1x64xf32>
    %c0_25 = arith.constant 0 : index
    %c0_26 = arith.constant 0 : index
    %33 = vector.load %arg18[%c0_25, %c0_26] : memref<19x64xf32, #tpu.memory_space<vmem>>, vector<16x64xf32>
    %34 = vector.broadcast %32 : vector<1x64xf32> to vector<16x64xf32>
    %35 = arith.mulf %34, %33 : vector<16x64xf32>
    %36 = arith.addf %31, %35 : vector<16x64xf32>
    %37 = vector.extract_strided_slice %28 {offsets = [1, 0], sizes = [1, 64], strides = [1, 1]} : vector<4x64xf32> to vector<1x64xf32>
    %c1 = arith.constant 1 : index
    %c0_27 = arith.constant 0 : index
    %38 = vector.load %arg18[%c1, %c0_27] : memref<19x64xf32, #tpu.memory_space<vmem>>, vector<16x64xf32>
    %39 = vector.broadcast %37 : vector<1x64xf32> to vector<16x64xf32>
    %40 = arith.mulf %39, %38 : vector<16x64xf32>
    %41 = arith.addf %36, %40 : vector<16x64xf32>
    %42 = vector.extract_strided_slice %28 {offsets = [2, 0], sizes = [1, 64], strides = [1, 1]} : vector<4x64xf32> to vector<1x64xf32>
    %c2 = arith.constant 2 : index
    %c0_28 = arith.constant 0 : index
    %43 = vector.load %arg18[%c2, %c0_28] : memref<19x64xf32, #tpu.memory_space<vmem>>, vector<16x64xf32>
    %44 = vector.broadcast %42 : vector<1x64xf32> to vector<16x64xf32>
    %45 = arith.mulf %44, %43 : vector<16x64xf32>
    %46 = arith.addf %41, %45 : vector<16x64xf32>
    %47 = vector.extract_strided_slice %28 {offsets = [3, 0], sizes = [1, 64], strides = [1, 1]} : vector<4x64xf32> to vector<1x64xf32>
    %c3_29 = arith.constant 3 : index
    %c0_30 = arith.constant 0 : index
    %48 = vector.load %arg18[%c3_29, %c0_30] : memref<19x64xf32, #tpu.memory_space<vmem>>, vector<16x64xf32>
    %49 = vector.broadcast %47 : vector<1x64xf32> to vector<16x64xf32>
    %50 = arith.mulf %49, %48 : vector<16x64xf32>
    %51 = arith.addf %46, %50 : vector<16x64xf32>
    %52 = arith.negf %51 : vector<16x64xf32>
    %53 = math.exp %52 : vector<16x64xf32>
    %cst_31 = arith.constant 1.000000e+00 : f32
    %54 = vector.broadcast %cst_31 : f32 to vector<16x64xf32>
    %55 = arith.addf %54, %53 : vector<16x64xf32>
    %56 = arith.divf %54, %55 : vector<16x64xf32>
    %57 = arith.mulf %51, %56 : vector<16x64xf32>
    %c0_32 = arith.constant 0 : index
    %c0_33 = arith.constant 0 : index
    %58 = vector.load %arg20[%c0_32, %c0_33] : memref<16x64xf32, #tpu.memory_space<vmem>>, vector<16x64xf32>
    tpu.vector_store %arg20[%c0_32, %c0_33], %57 {strides = array<i32>} : memref<16x64xf32, #tpu.memory_space<vmem>>, vector<16x64xf32>,
    %59 = arith.truncf %57 : vector<16x64xf32> to vector<16x64xbf16>
    %c0_34 = arith.constant 0 : index
    %c0_35 = arith.constant 0 : index
    %60 = vector.load %arg8[%c0_34, %c0_35] : memref<64x2xbf16, #tpu.memory_space<vmem>>, vector<64x2xbf16>
    %cst_36 = arith.constant dense<0.000000e+00> : vector<16x2xf32>
    %61 = tpu.matmul %59, %60, %cst_36 {dimension_numbers = #tpu.dot_dimension_numbers<[1], [0], [0], [1], [0, 0, 1, 1], [], []>} : vector<16x64xbf16>, vector<64x2xbf16>, vector<16x2xf32> -> vector<16x2xf32>
    %c0_37 = arith.constant 0 : index
    %c0_38 = arith.constant 0 : index
    %62 = vector.load %arg10[%c0_37, %c0_38] : memref<2x64xf32, #tpu.memory_space<vmem>>, vector<2x64xf32>
    %cst_39 = arith.constant dense<0.000000e+00> : vector<16x64xf32>
    %63 = tpu.matmul %61, %62, %cst_39 {dimension_numbers = #tpu.dot_dimension_numbers<[1], [0], [0], [1], [0, 0, 1, 1], [], []>} : vector<16x2xf32>, vector<2x64xf32>, vector<16x64xf32> -> vector<16x64xf32>
    %c0_40 = arith.constant 0 : index
    %c0_41 = arith.constant 0 : index
    %64 = vector.load %arg11[%c0_40, %c0_41] : memref<1x64xf32, #tpu.memory_space<vmem>>, vector<1x64xf32>
    %65 = vector.broadcast %64 : vector<1x64xf32> to vector<16x64xf32>
    %66 = arith.addf %63, %65 : vector<16x64xf32>
    %cst_42 = arith.constant 0.000000e+00 : f32
    %67 = vector.broadcast %cst_42 : f32 to vector<16x64xf32>
    %68 = arith.maximumf %66, %67 : vector<16x64xf32>
    %69 = vector.broadcast %cst_42 : f32 to vector<16x64xf32>
    %70 = arith.subf %66, %69 : vector<16x64xf32>
    %71 = arith.cmpf one, %70, %70 : vector<16x64xf32>
    %72 = vector.broadcast %cst_42 : f32 to vector<16x64xf32>
    %73 = arith.addf %66, %72 : vector<16x64xf32>
    %74 = math.absf %70 : vector<16x64xf32>
    %cst_43 = arith.constant 0.000000e+00 : f32
    %75 = vector.broadcast %cst_43 : f32 to vector<16x64xf32>
    %76 = arith.subf %75, %74 : vector<16x64xf32>
    %77 = math.exp %76 : vector<16x64xf32>
    %78 = math.log1p %77 : vector<16x64xf32>
    %79 = arith.addf %68, %78 : vector<16x64xf32>
    %80 = arith.select %71, %73, %79 : vector<16x64xi1>, vector<16x64xf32>
    %c0_44 = arith.constant 0 : index
    %c0_45 = arith.constant 0 : index
    %81 = vector.load %arg19[%c0_44, %c0_45] : memref<16x64xf32, #tpu.memory_space<vmem>>, vector<16x64xf32>
    tpu.vector_store %arg19[%c0_44, %c0_45], %80 {strides = array<i32>} : memref<16x64xf32, #tpu.memory_space<vmem>>, vector<16x64xf32>,
    %c0_46 = arith.constant 0 : index
    %c0_47 = arith.constant 0 : index
    %82 = vector.load %arg12[%c0_46, %c0_47] : memref<16x64xf32, #tpu.memory_space<vmem>>, vector<16x64xf32>
    %c0_48 = arith.constant 0 : index
    %c0_49 = arith.constant 0 : index
    %83 = vector.load %arg9[%c0_48, %c0_49] : memref<32x64xbf16, #tpu.memory_space<vmem>>, vector<32x64xbf16>
    %c0_50 = arith.constant 0 : index
    %c0_51 = arith.constant 0 : index
    %84 = vector.load %arg16[%c0_50, %c0_51] : memref<16x64xf32, #tpu.memory_space<vmem>>, vector<16x64xf32>
    %c0_i32_52 = arith.constant 0 : i32
    %c2_i32 = arith.constant 2 : i32
    %85 = arith.addi %c0_i32_52, %c2_i32 : i32
    %c1_i32 = arith.constant 1 : i32
    %86 = scf.for %arg22 = %c0_i32_52 to %85 step %c1_i32 iter_args(%arg23 = %84) -> (vector<16x64xf32>)  : i32 {
      %c8_i32 = arith.constant 8 : i32
      %108 = arith.muli %arg22, %c8_i32 : i32
      %109 = tpu.assume_multiple %108, 8 : i32
      %110 = arith.index_cast %109 : i32 to index
      %c0_69 = arith.constant 0 : index
      %111 = vector.load %arg19[%110, %c0_69] : memref<16x64xf32, #tpu.memory_space<vmem>>, vector<8x64xf32>
      %112 = arith.index_cast %109 : i32 to index
      %c0_70 = arith.constant 0 : index
      %113 = vector.load %arg20[%112, %c0_70] : memref<16x64xf32, #tpu.memory_space<vmem>>, vector<8x64xf32>
      %114 = arith.mulf %111, %113 : vector<8x64xf32>
      %115 = arith.truncf %113 : vector<8x64xf32> to vector<8x64xbf16>
      %cst_71 = arith.constant dense<0.000000e+00> : vector<32x8xf32>
      %116 = tpu.matmul %83, %115, %cst_71 {dimension_numbers = #tpu.dot_dimension_numbers<[1], [1], [0], [0], [0, 0, 1, 0], [], []>} : vector<32x64xbf16>, vector<8x64xbf16>, vector<32x8xf32> -> vector<32x8xf32>
      %117 = vector.extract_strided_slice %111 {offsets = [0, 0], sizes = [1, 64], strides = [1, 1]} : vector<8x64xf32> to vector<1x64xf32>
      %118 = vector.extract_strided_slice %114 {offsets = [0, 0], sizes = [1, 64], strides = [1, 1]} : vector<8x64xf32> to vector<1x64xf32>
      %119 = vector.extract_strided_slice %116 {offsets = [0, 0], sizes = [16, 1], strides = [1, 1]} : vector<32x8xf32> to vector<16x1xf32>
      %120 = vector.extract_strided_slice %116 {offsets = [16, 0], sizes = [16, 1], strides = [1, 1]} : vector<32x8xf32> to vector<16x1xf32>
      %121 = vector.broadcast %117 : vector<1x64xf32> to vector<16x64xf32>
      %122 = arith.mulf %121, %82 : vector<16x64xf32>
      %123 = math.exp %122 : vector<16x64xf32>
      %124 = arith.mulf %123, %arg23 : vector<16x64xf32>
      %125 = vector.broadcast %119 : vector<16x1xf32> to vector<16x64xf32>
      %126 = vector.broadcast %118 : vector<1x64xf32> to vector<16x64xf32>
      %127 = arith.mulf %125, %126 : vector<16x64xf32>
      %128 = arith.addf %124, %127 : vector<16x64xf32>
      %129 = vector.broadcast %120 : vector<16x1xf32> to vector<16x64xf32>
      %130 = arith.mulf %129, %128 : vector<16x64xf32>
      %cst_72 = arith.constant dense<0.000000e+00> : vector<64xf32>
      %131 = vector.multi_reduction <add>, %130, %cst_72 [0] : vector<16x64xf32> to vector<64xf32>
      %132 = vector.shape_cast %131 : vector<64xf32> to vector<1x64xf32>
      %133 = vector.extract_strided_slice %111 {offsets = [1, 0], sizes = [1, 64], strides = [1, 1]} : vector<8x64xf32> to vector<1x64xf32>
      %134 = vector.extract_strided_slice %114 {offsets = [1, 0], sizes = [1, 64], strides = [1, 1]} : vector<8x64xf32> to vector<1x64xf32>
      %135 = vector.extract_strided_slice %116 {offsets = [0, 1], sizes = [16, 1], strides = [1, 1]} : vector<32x8xf32> to vector<16x1xf32>
      %136 = vector.extract_strided_slice %116 {offsets = [16, 1], sizes = [16, 1], strides = [1, 1]} : vector<32x8xf32> to vector<16x1xf32>
      %137 = vector.broadcast %133 : vector<1x64xf32> to vector<16x64xf32>
      %138 = arith.mulf %137, %82 : vector<16x64xf32>
      %139 = math.exp %138 : vector<16x64xf32>
      %140 = arith.mulf %139, %128 : vector<16x64xf32>
      %141 = vector.broadcast %135 : vector<16x1xf32> to vector<16x64xf32>
      %142 = vector.broadcast %134 : vector<1x64xf32> to vector<16x64xf32>
      %143 = arith.mulf %141, %142 : vector<16x64xf32>
      %144 = arith.addf %140, %143 : vector<16x64xf32>
      %145 = vector.broadcast %136 : vector<16x1xf32> to vector<16x64xf32>
      %146 = arith.mulf %145, %144 : vector<16x64xf32>
      %cst_73 = arith.constant dense<0.000000e+00> : vector<64xf32>
      %147 = vector.multi_reduction <add>, %146, %cst_73 [0] : vector<16x64xf32> to vector<64xf32>
      %148 = vector.shape_cast %147 : vector<64xf32> to vector<1x64xf32>
      %149 = vector.extract_strided_slice %111 {offsets = [2, 0], sizes = [1, 64], strides = [1, 1]} : vector<8x64xf32> to vector<1x64xf32>
      %150 = vector.extract_strided_slice %114 {offsets = [2, 0], sizes = [1, 64], strides = [1, 1]} : vector<8x64xf32> to vector<1x64xf32>
      %151 = vector.extract_strided_slice %116 {offsets = [0, 2], sizes = [16, 1], strides = [1, 1]} : vector<32x8xf32> to vector<16x1xf32>
      %152 = vector.extract_strided_slice %116 {offsets = [16, 2], sizes = [16, 1], strides = [1, 1]} : vector<32x8xf32> to vector<16x1xf32>
      %153 = vector.broadcast %149 : vector<1x64xf32> to vector<16x64xf32>
      %154 = arith.mulf %153, %82 : vector<16x64xf32>
      %155 = math.exp %154 : vector<16x64xf32>
      %156 = arith.mulf %155, %144 : vector<16x64xf32>
      %157 = vector.broadcast %151 : vector<16x1xf32> to vector<16x64xf32>
      %158 = vector.broadcast %150 : vector<1x64xf32> to vector<16x64xf32>
      %159 = arith.mulf %157, %158 : vector<16x64xf32>
      %160 = arith.addf %156, %159 : vector<16x64xf32>
      %161 = vector.broadcast %152 : vector<16x1xf32> to vector<16x64xf32>
      %162 = arith.mulf %161, %160 : vector<16x64xf32>
      %cst_74 = arith.constant dense<0.000000e+00> : vector<64xf32>
      %163 = vector.multi_reduction <add>, %162, %cst_74 [0] : vector<16x64xf32> to vector<64xf32>
      %164 = vector.shape_cast %163 : vector<64xf32> to vector<1x64xf32>
      %165 = vector.extract_strided_slice %111 {offsets = [3, 0], sizes = [1, 64], strides = [1, 1]} : vector<8x64xf32> to vector<1x64xf32>
      %166 = vector.extract_strided_slice %114 {offsets = [3, 0], sizes = [1, 64], strides = [1, 1]} : vector<8x64xf32> to vector<1x64xf32>
      %167 = vector.extract_strided_slice %116 {offsets = [0, 3], sizes = [16, 1], strides = [1, 1]} : vector<32x8xf32> to vector<16x1xf32>
      %168 = vector.extract_strided_slice %116 {offsets = [16, 3], sizes = [16, 1], strides = [1, 1]} : vector<32x8xf32> to vector<16x1xf32>
      %169 = vector.broadcast %165 : vector<1x64xf32> to vector<16x64xf32>
      %170 = arith.mulf %169, %82 : vector<16x64xf32>
      %171 = math.exp %170 : vector<16x64xf32>
      %172 = arith.mulf %171, %160 : vector<16x64xf32>
      %173 = vector.broadcast %167 : vector<16x1xf32> to vector<16x64xf32>
      %174 = vector.broadcast %166 : vector<1x64xf32> to vector<16x64xf32>
      %175 = arith.mulf %173, %174 : vector<16x64xf32>
      %176 = arith.addf %172, %175 : vector<16x64xf32>
      %177 = vector.broadcast %168 : vector<16x1xf32> to vector<16x64xf32>
      %178 = arith.mulf %177, %176 : vector<16x64xf32>
      %cst_75 = arith.constant dense<0.000000e+00> : vector<64xf32>
      %179 = vector.multi_reduction <add>, %178, %cst_75 [0] : vector<16x64xf32> to vector<64xf32>
      %180 = vector.shape_cast %179 : vector<64xf32> to vector<1x64xf32>
      %181 = vector.extract_strided_slice %111 {offsets = [4, 0], sizes = [1, 64], strides = [1, 1]} : vector<8x64xf32> to vector<1x64xf32>
      %182 = vector.extract_strided_slice %114 {offsets = [4, 0], sizes = [1, 64], strides = [1, 1]} : vector<8x64xf32> to vector<1x64xf32>
      %183 = vector.extract_strided_slice %116 {offsets = [0, 4], sizes = [16, 1], strides = [1, 1]} : vector<32x8xf32> to vector<16x1xf32>
      %184 = vector.extract_strided_slice %116 {offsets = [16, 4], sizes = [16, 1], strides = [1, 1]} : vector<32x8xf32> to vector<16x1xf32>
      %185 = vector.broadcast %181 : vector<1x64xf32> to vector<16x64xf32>
      %186 = arith.mulf %185, %82 : vector<16x64xf32>
      %187 = math.exp %186 : vector<16x64xf32>
      %188 = arith.mulf %187, %176 : vector<16x64xf32>
      %189 = vector.broadcast %183 : vector<16x1xf32> to vector<16x64xf32>
      %190 = vector.broadcast %182 : vector<1x64xf32> to vector<16x64xf32>
      %191 = arith.mulf %189, %190 : vector<16x64xf32>
      %192 = arith.addf %188, %191 : vector<16x64xf32>
      %193 = vector.broadcast %184 : vector<16x1xf32> to vector<16x64xf32>
      %194 = arith.mulf %193, %192 : vector<16x64xf32>
      %cst_76 = arith.constant dense<0.000000e+00> : vector<64xf32>
      %195 = vector.multi_reduction <add>, %194, %cst_76 [0] : vector<16x64xf32> to vector<64xf32>
      %196 = vector.shape_cast %195 : vector<64xf32> to vector<1x64xf32>
      %197 = vector.extract_strided_slice %111 {offsets = [5, 0], sizes = [1, 64], strides = [1, 1]} : vector<8x64xf32> to vector<1x64xf32>
      %198 = vector.extract_strided_slice %114 {offsets = [5, 0], sizes = [1, 64], strides = [1, 1]} : vector<8x64xf32> to vector<1x64xf32>
      %199 = vector.extract_strided_slice %116 {offsets = [0, 5], sizes = [16, 1], strides = [1, 1]} : vector<32x8xf32> to vector<16x1xf32>
      %200 = vector.extract_strided_slice %116 {offsets = [16, 5], sizes = [16, 1], strides = [1, 1]} : vector<32x8xf32> to vector<16x1xf32>
      %201 = vector.broadcast %197 : vector<1x64xf32> to vector<16x64xf32>
      %202 = arith.mulf %201, %82 : vector<16x64xf32>
      %203 = math.exp %202 : vector<16x64xf32>
      %204 = arith.mulf %203, %192 : vector<16x64xf32>
      %205 = vector.broadcast %199 : vector<16x1xf32> to vector<16x64xf32>
      %206 = vector.broadcast %198 : vector<1x64xf32> to vector<16x64xf32>
      %207 = arith.mulf %205, %206 : vector<16x64xf32>
      %208 = arith.addf %204, %207 : vector<16x64xf32>
      %209 = vector.broadcast %200 : vector<16x1xf32> to vector<16x64xf32>
      %210 = arith.mulf %209, %208 : vector<16x64xf32>
      %cst_77 = arith.constant dense<0.000000e+00> : vector<64xf32>
      %211 = vector.multi_reduction <add>, %210, %cst_77 [0] : vector<16x64xf32> to vector<64xf32>
      %212 = vector.shape_cast %211 : vector<64xf32> to vector<1x64xf32>
      %213 = vector.extract_strided_slice %111 {offsets = [6, 0], sizes = [1, 64], strides = [1, 1]} : vector<8x64xf32> to vector<1x64xf32>
      %214 = vector.extract_strided_slice %114 {offsets = [6, 0], sizes = [1, 64], strides = [1, 1]} : vector<8x64xf32> to vector<1x64xf32>
      %215 = vector.extract_strided_slice %116 {offsets = [0, 6], sizes = [16, 1], strides = [1, 1]} : vector<32x8xf32> to vector<16x1xf32>
      %216 = vector.extract_strided_slice %116 {offsets = [16, 6], sizes = [16, 1], strides = [1, 1]} : vector<32x8xf32> to vector<16x1xf32>
      %217 = vector.broadcast %213 : vector<1x64xf32> to vector<16x64xf32>
      %218 = arith.mulf %217, %82 : vector<16x64xf32>
      %219 = math.exp %218 : vector<16x64xf32>
      %220 = arith.mulf %219, %208 : vector<16x64xf32>
      %221 = vector.broadcast %215 : vector<16x1xf32> to vector<16x64xf32>
      %222 = vector.broadcast %214 : vector<1x64xf32> to vector<16x64xf32>
      %223 = arith.mulf %221, %222 : vector<16x64xf32>
      %224 = arith.addf %220, %223 : vector<16x64xf32>
      %225 = vector.broadcast %216 : vector<16x1xf32> to vector<16x64xf32>
      %226 = arith.mulf %225, %224 : vector<16x64xf32>
      %cst_78 = arith.constant dense<0.000000e+00> : vector<64xf32>
      %227 = vector.multi_reduction <add>, %226, %cst_78 [0] : vector<16x64xf32> to vector<64xf32>
      %228 = vector.shape_cast %227 : vector<64xf32> to vector<1x64xf32>
      %229 = vector.extract_strided_slice %111 {offsets = [7, 0], sizes = [1, 64], strides = [1, 1]} : vector<8x64xf32> to vector<1x64xf32>
      %230 = vector.extract_strided_slice %114 {offsets = [7, 0], sizes = [1, 64], strides = [1, 1]} : vector<8x64xf32> to vector<1x64xf32>
      %231 = vector.extract_strided_slice %116 {offsets = [0, 7], sizes = [16, 1], strides = [1, 1]} : vector<32x8xf32> to vector<16x1xf32>
      %232 = vector.extract_strided_slice %116 {offsets = [16, 7], sizes = [16, 1], strides = [1, 1]} : vector<32x8xf32> to vector<16x1xf32>
      %233 = vector.broadcast %229 : vector<1x64xf32> to vector<16x64xf32>
      %234 = arith.mulf %233, %82 : vector<16x64xf32>
      %235 = math.exp %234 : vector<16x64xf32>
      %236 = arith.mulf %235, %224 : vector<16x64xf32>
      %237 = vector.broadcast %231 : vector<16x1xf32> to vector<16x64xf32>
      %238 = vector.broadcast %230 : vector<1x64xf32> to vector<16x64xf32>
      %239 = arith.mulf %237, %238 : vector<16x64xf32>
      %240 = arith.addf %236, %239 : vector<16x64xf32>
      %241 = vector.broadcast %232 : vector<16x1xf32> to vector<16x64xf32>
      %242 = arith.mulf %241, %240 : vector<16x64xf32>
      %cst_79 = arith.constant dense<0.000000e+00> : vector<64xf32>
      %243 = vector.multi_reduction <add>, %242, %cst_79 [0] : vector<16x64xf32> to vector<64xf32>
      %244 = vector.shape_cast %243 : vector<64xf32> to vector<1x64xf32>
      %245 = tpu.concatenate %132, %148, %164, %180, %196, %212, %228, %244 in 0 : vector<1x64xf32>, vector<1x64xf32>, vector<1x64xf32>, vector<1x64xf32>, vector<1x64xf32>, vector<1x64xf32>, vector<1x64xf32>, vector<1x64xf32> -> vector<8x64xf32>
      %246 = arith.index_cast %109 : i32 to index
      %c0_80 = arith.constant 0 : index
      %247 = vector.load %arg21[%246, %c0_80] : memref<16x64xf32, #tpu.memory_space<vmem>>, vector<8x64xf32>
      tpu.vector_store %arg21[%246, %c0_80], %245 {strides = array<i32>} : memref<16x64xf32, #tpu.memory_space<vmem>>, vector<8x64xf32>,
      scf.yield %240 : vector<16x64xf32>
    }
    %c2_i32_53 = arith.constant 2 : i32
    %c0_54 = arith.constant 0 : index
    %c0_55 = arith.constant 0 : index
    %87 = vector.load %arg16[%c0_54, %c0_55] : memref<16x64xf32, #tpu.memory_space<vmem>>, vector<16x64xf32>
    tpu.vector_store %arg16[%c0_54, %c0_55], %86 {strides = array<i32>} : memref<16x64xf32, #tpu.memory_space<vmem>>, vector<16x64xf32>,
    %c0_56 = arith.constant 0 : index
    %c0_57 = arith.constant 0 : index
    %88 = vector.load %arg21[%c0_56, %c0_57] : memref<16x64xf32, #tpu.memory_space<vmem>>, vector<16x64xf32>
    %c0_58 = arith.constant 0 : index
    %c0_59 = arith.constant 0 : index
    %89 = vector.load %arg20[%c0_58, %c0_59] : memref<16x64xf32, #tpu.memory_space<vmem>>, vector<16x64xf32>
    %c0_60 = arith.constant 0 : index
    %c0_61 = arith.constant 0 : index
    %90 = vector.load %arg13[%c0_60, %c0_61] : memref<1x64xf32, #tpu.memory_space<vmem>>, vector<1x64xf32>
    %91 = vector.broadcast %90 : vector<1x64xf32> to vector<16x64xf32>
    %92 = arith.mulf %89, %91 : vector<16x64xf32>
    %93 = arith.addf %88, %92 : vector<16x64xf32>
    %94 = arith.negf %22 : vector<16x64xf32>
    %95 = math.exp %94 : vector<16x64xf32>
    %cst_62 = arith.constant 1.000000e+00 : f32
    %96 = vector.broadcast %cst_62 : f32 to vector<16x64xf32>
    %97 = arith.addf %96, %95 : vector<16x64xf32>
    %98 = arith.divf %96, %97 : vector<16x64xf32>
    %99 = arith.mulf %22, %98 : vector<16x64xf32>
    %100 = arith.mulf %93, %99 : vector<16x64xf32>
    %101 = arith.truncf %100 : vector<16x64xf32> to vector<16x64xbf16>
    %c0_63 = arith.constant 0 : index
    %c0_64 = arith.constant 0 : index
    %102 = vector.load %arg14[%c0_63, %c0_64] : memref<64x32xbf16, #tpu.memory_space<vmem>>, vector<64x32xbf16>
    %cst_65 = arith.constant dense<0.000000e+00> : vector<16x32xf32>
    %103 = tpu.matmul %101, %102, %cst_65 {dimension_numbers = #tpu.dot_dimension_numbers<[1], [0], [0], [1], [0, 0, 1, 1], [], []>} : vector<16x64xbf16>, vector<64x32xbf16>, vector<16x32xf32> -> vector<16x32xf32>
    %104 = arith.addf %4, %103 : vector<16x32xf32>
    %c0_66 = arith.constant 0 : index
    %c0_67 = arith.constant 0 : index
    %c0_68 = arith.constant 0 : index
    %105 = vector.load %arg15[%c0_66, %c0_67, %c0_68] : memref<1x16x32xf32, #tpu.memory_space<vmem>>, vector<1x16x32xf32>
    %106 = vector.shape_cast %105 : vector<1x16x32xf32> to vector<16x32xf32>
    %107 = vector.shape_cast %104 : vector<16x32xf32> to vector<1x16x32xf32>
    tpu.vector_store %arg15[%c0_66, %c0_67, %c0_68], %107 {strides = array<i32>} : memref<1x16x32xf32, #tpu.memory_space<vmem>>, vector<1x16x32xf32>,
    return
  }
  func.func @transform_0(%arg0: i32, %arg1: i32) -> (i32, i32, i32) {
    %c0_i32 = arith.constant 0 : i32
    %c0_i32_0 = arith.constant 0 : i32
    return %arg0, %arg1, %c0_i32 : i32, i32, i32
  }
  func.func @transform_1(%arg0: i32, %arg1: i32) -> (i32, i32) {
    %c0_i32 = arith.constant 0 : i32
    %c0_i32_0 = arith.constant 0 : i32
    %c0_i32_1 = arith.constant 0 : i32
    return %c0_i32, %c0_i32_0 : i32, i32
  }
  func.func @transform_2(%arg0: i32, %arg1: i32) -> (i32, i32) {
    %c0_i32 = arith.constant 0 : i32
    %c0_i32_0 = arith.constant 0 : i32
    %c0_i32_1 = arith.constant 0 : i32
    return %c0_i32, %c0_i32_0 : i32, i32
  }
  func.func @transform_3(%arg0: i32, %arg1: i32) -> (i32, i32) {
    %c0_i32 = arith.constant 0 : i32
    %c0_i32_0 = arith.constant 0 : i32
    %c0_i32_1 = arith.constant 0 : i32
    return %c0_i32, %c0_i32_0 : i32, i32
  }
  func.func @transform_4(%arg0: i32, %arg1: i32) -> (i32, i32) {
    %c0_i32 = arith.constant 0 : i32
    %c0_i32_0 = arith.constant 0 : i32
    %c0_i32_1 = arith.constant 0 : i32
    return %c0_i32, %c0_i32_0 : i32, i32
  }
  func.func @transform_5(%arg0: i32, %arg1: i32) -> (i32, i32) {
    %c0_i32 = arith.constant 0 : i32
    %c0_i32_0 = arith.constant 0 : i32
    %c0_i32_1 = arith.constant 0 : i32
    return %c0_i32, %c0_i32_0 : i32, i32
  }
  func.func @transform_6(%arg0: i32, %arg1: i32) -> (i32, i32) {
    %c0_i32 = arith.constant 0 : i32
    %c0_i32_0 = arith.constant 0 : i32
    %c0_i32_1 = arith.constant 0 : i32
    return %c0_i32, %c0_i32_0 : i32, i32
  }
  func.func @transform_7(%arg0: i32, %arg1: i32) -> (i32, i32) {
    %c0_i32 = arith.constant 0 : i32
    %c0_i32_0 = arith.constant 0 : i32
    %c0_i32_1 = arith.constant 0 : i32
    return %c0_i32, %c0_i32_0 : i32, i32
  }
  func.func @transform_8(%arg0: i32, %arg1: i32) -> (i32, i32) {
    %c0_i32 = arith.constant 0 : i32
    %c0_i32_0 = arith.constant 0 : i32
    %c0_i32_1 = arith.constant 0 : i32
    return %c0_i32, %c0_i32_0 : i32, i32
  }
  func.func @transform_9(%arg0: i32, %arg1: i32) -> (i32, i32) {
    %c0_i32 = arith.constant 0 : i32
    %c0_i32_0 = arith.constant 0 : i32
    %c0_i32_1 = arith.constant 0 : i32
    return %c0_i32, %c0_i32_0 : i32, i32
  }
  func.func @transform_10(%arg0: i32, %arg1: i32) -> (i32, i32) {
    %c0_i32 = arith.constant 0 : i32
    %c0_i32_0 = arith.constant 0 : i32
    %c0_i32_1 = arith.constant 0 : i32
    return %c0_i32, %c0_i32_0 : i32, i32
  }
  func.func @transform_11(%arg0: i32, %arg1: i32) -> (i32, i32) {
    %c0_i32 = arith.constant 0 : i32
    %c0_i32_0 = arith.constant 0 : i32
    %c0_i32_1 = arith.constant 0 : i32
    return %c0_i32, %c0_i32_0 : i32, i32
  }
  func.func @transform_12(%arg0: i32, %arg1: i32) -> (i32, i32) {
    %c0_i32 = arith.constant 0 : i32
    %c0_i32_0 = arith.constant 0 : i32
    %c0_i32_1 = arith.constant 0 : i32
    return %c0_i32, %c0_i32_0 : i32, i32
  }
  func.func @transform_13(%arg0: i32, %arg1: i32) -> (i32, i32, i32) {
    %c0_i32 = arith.constant 0 : i32
    %c0_i32_0 = arith.constant 0 : i32
    return %arg0, %arg1, %c0_i32 : i32, i32, i32
  }
}

</mosaic_0001>

<bundles_post_ra>
// kernel: _lambda_.5
= control target key start
LH: loop header
LB: loop body
LE: loop exit
PB: predicated region body
PF: predicated region fallthrough
CT: control target
= control target key end

     0   :  { %vm28_vm0 = vcmask 261120   ;;  %s501_s0 = inlined_call_operand.vmem [shape: f32[48,32], index: 0, kind: input, shape index: {}]   ;;  %s502_s1 = inlined_call_operand.vmem [shape: f32[1,32], index: 1, kind: input, shape index: {}]   ;;  %s503_s2 = inlined_call_operand.vmem [shape: bf16[32,512], index: 2, kind: input, shape index: {}]   ;;  %s504_s3 = inlined_call_operand.hbm [shape: f32[48,512], index: 3, kind: output, shape index: {}]  }
   0x1   :  { %v405_v0 = vld [vmem:[%s501_s0] sm:$0xff]  ;;  %v410_v1 = vld [vmem:[%s501_s0 + $0x10] sm:$0xff]  ;;  %v415_v2 = vld [vmem:[%s501_s0 + $0x8] sm:$0xff] }
   0x2   :  { %v22_v3 = vmul.f32 %v405_v0, %v405_v0  ;;  %v24_v4 = vmul.f32 %v410_v1, %v410_v1  ;;  %v23_v5 = vmul.f32 %v415_v2, %v415_v2  ;;  %v426_v6 = vld [vmem:[%s501_s0 + $0x18] sm:$0xff]  ;;  %v431_v7 = vld [vmem:[%s501_s0 + $0x28] sm:$0xff]  ;;  %v436_v8 = vld [vmem:[%s501_s0 + $0x20] sm:$0xff] }
   0x3   :  { %v25_v9 = vmul.f32 %v426_v6, %v426_v6  ;;  %v27_v14 = vmul.f32 %v431_v7, %v431_v7  ;;  %v26_v15 = vmul.f32 %v436_v8, %v436_v8 }
   0x4   :  { %v29_v10 = vsel %vm28_vm0, %v22_v3, 0.0  ;;  %v35_v11 = vsel %vm28_vm0, %v24_v4, 0.0  ;;  %v32_v12 = vsel %vm28_vm0, %v23_v5, 0.0 }
   0x5   :  { %30 = vadd.xlane.f32.xlu0 %v29_v10  ;;  %36 = vadd.xlane.f32.xlu1 %v35_v11  ;;  %v38_v13 = vsel %vm28_vm0, %v25_v9, 0.0 }
   0x6   :  { %8 = vsyncpa [#allocation3], 0  ;;  %v44_v16 = vsel %vm28_vm0, %v27_v14, 0.0  ;;  %v41_v17 = vsel %vm28_vm0, %v26_v15, 0.0  ;;  %v330_v18 = vld [vmem:[%s503_s2 + $0x4] ss:$16 sps:$4 sm:$0xff]  }
   0x7   :  { %v332_v19 = vld [vmem:[%s503_s2 + $0xc] ss:$16 sps:$4 sm:$0xff]   ;;  %v334_v20 = vld [vmem:[%s503_s2] ss:$16 sps:$4 sm:$0xff]   ;;  %v335_v21 = vld [vmem:[%s503_s2 + $0x8] ss:$16 sps:$4 sm:$0xff]   ;;  %145 = vmatprep.subr.bf16.mxu0 %v330_v18 }
   0x8   :  { %208 = vmatprep.subr.bf16.mxu1 %v332_v19  ;;  %146 = vmatpush1.bf16.msra.mxu0 %v334_v20  ;;  %v336_v22 = vld [vmem:[%s503_s2 + $0x24] ss:$16 sps:$4 sm:$0xff]   ;;  %v338_v23 = vld [vmem:[%s503_s2 + $0x2c] ss:$16 sps:$4 sm:$0xff]   ;;  %v340_v24 = vld [vmem:[%s503_s2 + $0x20] ss:$16 sps:$4 sm:$0xff]  }
   0x9   :  { %33 = vadd.xlane.f32.xlu0 %v32_v12  ;;  %39 = vadd.xlane.f32.xlu1 %v38_v13  ;;  %v341_v25 = vld [vmem:[%s503_s2 + $0x28] ss:$16 sps:$4 sm:$0xff]   ;;  %v378_v26 = vmov 0   ;;  %v311_v48 = vld [vmem:[%s502_s1] ss:$0 sm:$0xff]  ;;  %s379_s1 = smov [#allocation2]  }
   0xa   :  { %209 = vmatpush1.bf16.msra.mxu1 %v335_v21  ;;  %147 = vmatprep.subr.bf16.mxu0 %v336_v22  ;;  %s300_s13 = sshll.u32 %s379_s1, 4  ;;  %s301_s13 = int_to_ptr.vmem [resolvable:$true] %s300_s13 }
   0xb   :  { %210 = vmatprep.subr.bf16.mxu1 %v338_v23  ;;  %177 = vmatprep.mubr.bf16.mxu0 %v378_v26  ;;  %s354_s14 = scalar_lea.vmem %s301_s13, 3072  ;;  %p359_p1 = scmp.lt.s32.totalorder %s301_s13, %s301_s13 }
   0xc   :  { %148 = vmatpush1.bf16.msra.mxu0 %v340_v24  ;;  %240 = vmatprep.mubr.bf16.mxu1 %v378_v26  ;;  %p355_p0 = scmp.ne.s32.totalorder %s301_s13, %s354_s14  ;;  %p360_p2 = scmp.lt.s32.totalorder %s354_s14, %s354_s14 }
   0xd   :  { %45 = vadd.xlane.f32.xlu1 %v44_v16  ;;  %42 = vadd.xlane.f32.xlu0 %v41_v17 }
   0xe   :  { %211 = vmatpush1.bf16.msra.mxu1 %v341_v25  ;;  %p361_p3 = por %p360_p2, %p359_p1 }
  0x10   :  { %p362_p4 = pnand %p361_p3, %p355_p0 }
  0x92   :  { %v31_v27 = vpop.xlane.xlu0 %30  ;;  %v37_v28 = vpop.xlane.xlu1 %36 }
  0x93   :  { %v48_v29 = vmul.f32 0.03125, %v31_v27  ;;  %v50_v30 = vmul.f32 0.03125, %v37_v28 }
  0x95   :  { %v54_v31 = vadd.f32 1e-05, %v48_v29  ;;  %v56_v36 = vadd.f32 1e-05, %v50_v30 }
  0x96   :  { %v34_v32 = vpop.xlane.xlu0 %33  ;;  %v40_v33 = vpop.xlane.xlu1 %39 }
  0x97   :  { %342 = vrsqrt.f32 %v54_v31  ;;  %v49_v34 = vmul.f32 0.03125, %v34_v32  ;;  %v51_v35 = vmul.f32 0.03125, %v40_v33 }
  0x99   :  { %v55_v37 = vadd.f32 1e-05, %v49_v34  ;;  %v57_v38 = vadd.f32 1e-05, %v51_v35 }
  0x9a   :  { %v46_v39 = vpop.xlane.xlu1 %45  ;;  %v43_v40 = vpop.xlane.xlu0 %42 }
  0x9b   :  { %344 = vrsqrt.f32 %v55_v37  ;;  %v53_v41 = vmul.f32 0.03125, %v46_v39  ;;  %v52_v42 = vmul.f32 0.03125, %v43_v40 }
  0x9c   :  { %346 = vrsqrt.f32 %v56_v36 }
  0x9d   :  { %348 = vrsqrt.f32 %v57_v38  ;;  %v59_v43 = vadd.f32 1e-05, %v53_v41  ;;  %v58_v44 = vadd.f32 1e-05, %v52_v42 }
  0x9f   :  { %350 = vrsqrt.f32 %v59_v43 }
  0xa0   :  { %352 = vrsqrt.f32 %v58_v44 }
  0xa1   :  { %v343_v45 = vpop.eup %342 }
  0xa2   :  { %v66_v46 = vmul.f32 %v343_v45, %v405_v0 }
  0xa4   :  { %v79_v52 = vmul.f32 %v311_v48, %v66_v46 }
  0xa5   :  { %v345_v47 = vpop.eup %344 }
  0xa6   :  { %v347_v49 = vpop.eup %346  ;;  %v67_v50 = vmul.f32 %v345_v47, %v415_v2 }
  0xa7   :  { %v349_v51 = vpop.eup %348  ;;  %v68_v55 = vmul.f32 %v347_v49, %v410_v1 }
  0xa8   :  { %v80_v53 = vmul.f32 %v311_v48, %v67_v50  ;;  %v69_v56 = vmul.f32 %v349_v51, %v426_v6 }
  0xa9   :  { %v351_v57 = vpop.eup %350  ;;  %v81_v59 = vmul.f32 %v311_v48, %v68_v55 }
  0xaa   :  { %v85_v54 = vpack.c.bf16 %v80_v53, %v79_v52  ;;  %v353_v58 = vpop.eup %352  ;;  %v82_v60 = vmul.f32 %v311_v48, %v69_v56  ;;  %v71_v62 = vmul.f32 %v351_v57, %v431_v7 }
  0xab   :  { %v70_v61 = vmul.f32 %v353_v58, %v436_v8 }
  0xac   :  { %320 = vmatmul.mubr.msk.bf16.vlgmr.msra.gmra.mrb[0].mxu0 %vm28_vm0, %v85_v54  ;;  %323 = vmatmul.mubr.msk.bf16.vlgmr.msra.gmra.mrb[0].mxu1 %vm28_vm0, %v85_v54  ;;  %v86_v63 = vpack.c.bf16 %v82_v60, %v81_v59  ;;  %v84_v1 = vmul.f32 %v311_v48, %v71_v62 }
  0xad   :  { %187 = vmatprep.mubr.bf16.mxu0 %v378_v26  ;;  %250 = vmatprep.mubr.bf16.mxu1 %v378_v26  ;;  %v83_v0 = vmul.f32 %v311_v48, %v70_v61 }
  0xaf   :  { %v87_v2 = vpack.c.bf16 %v84_v1, %v83_v0 }
  0xb4   :  { %321 = vmatmul.mubr.msk.bf16.gmra.mrb[4].mxu0 %vm28_vm0, %v86_v63  ;;  %324 = vmatmul.mubr.msk.bf16.gmra.mrb[4].mxu1 %vm28_vm0, %v86_v63 }
  0xb5   :  { %197 = vmatprep.mubr.bf16.mxu0 %v378_v26  ;;  %260 = vmatprep.mubr.bf16.mxu1 %v378_v26 }
  0xbc   :  { %322 = vmatmul.mubr.msk.bf16.gmra.mrb[8].mxu0 %vm28_vm0, %v87_v2  ;;  %325 = vmatmul.mubr.msk.bf16.gmra.mrb[8].mxu1 %vm28_vm0, %v87_v2 }
 0x17f   :  { %v179_v3 = vpop.f32.mrb[0].mxu0  ;;  %v242_v4 = vpop.f32.mrb[0].mxu1 }
 0x180   :  { %271 = vst [vmem:[#allocation2] sm:$0xff] %v179_v3  ;;  %273 = vst [vmem:[#allocation2 + $0x10] sm:$0xff] %v242_v4  ;;  %v181_v5 = vpop.f32.mrb[1].mxu0  ;;  %v244_v6 = vpop.f32.mrb[1].mxu1 }
 0x181   :  { %272 = vst [vmem:[#allocation2 + $0x8] sm:$0xff] %v181_v5  ;;  %274 = vst [vmem:[#allocation2 + $0x18] sm:$0xff] %v244_v6  ;;  %v183_v7 = vpop.f32.mrb[2].mxu0  ;;  %v246_v8 = vpop.f32.mrb[2].mxu1 }
 0x182   :  { %275 = vst [vmem:[#allocation2 + $0x20] sm:$0xff] %v183_v7  ;;  %277 = vst [vmem:[#allocation2 + $0x30] sm:$0xff] %v246_v8  ;;  %v185_v9 = vpop.f32.mrb[3].mxu0  ;;  %v248_v10 = vpop.f32.mrb[3].mxu1 }
 0x183   :  { %276 = vst [vmem:[#allocation2 + $0x28] sm:$0xff] %v185_v9  ;;  %278 = vst [vmem:[#allocation2 + $0x38] sm:$0xff] %v248_v10 }
 0x187   :  { %v189_v11 = vpop.f32.mrb[4].mxu0  ;;  %v252_v12 = vpop.f32.mrb[4].mxu1 }
 0x188   :  { %279 = vst [vmem:[#allocation2 + $0x40] sm:$0xff] %v189_v11  ;;  %281 = vst [vmem:[#allocation2 + $0x50] sm:$0xff] %v252_v12  ;;  %v191_v13 = vpop.f32.mrb[5].mxu0  ;;  %v254_v14 = vpop.f32.mrb[5].mxu1 }
 0x189   :  { %280 = vst [vmem:[#allocation2 + $0x48] sm:$0xff] %v191_v13  ;;  %282 = vst [vmem:[#allocation2 + $0x58] sm:$0xff] %v254_v14  ;;  %v193_v15 = vpop.f32.mrb[6].mxu0  ;;  %v256_v16 = vpop.f32.mrb[6].mxu1 }
 0x18a   :  { %283 = vst [vmem:[#allocation2 + $0x60] sm:$0xff] %v193_v15  ;;  %285 = vst [vmem:[#allocation2 + $0x70] sm:$0xff] %v256_v16  ;;  %v195_v17 = vpop.f32.mrb[7].mxu0  ;;  %v258_v18 = vpop.f32.mrb[7].mxu1 }
 0x18b   :  { %284 = vst [vmem:[#allocation2 + $0x68] sm:$0xff] %v195_v17  ;;  %286 = vst [vmem:[#allocation2 + $0x78] sm:$0xff] %v258_v18 }
 0x18f   :  { %v199_v19 = vpop.f32.mrb[8].mxu0  ;;  %v262_v20 = vpop.f32.mrb[8].mxu1 }
 0x190   :  { %287 = vst [vmem:[#allocation2 + $0x80] sm:$0xff] %v199_v19  ;;  %289 = vst [vmem:[#allocation2 + $0x90] sm:$0xff] %v262_v20  ;;  %v201_v21 = vpop.f32.mrb[9].mxu0  ;;  %v264_v22 = vpop.f32.mrb[9].mxu1 }
 0x191   :  { %288 = vst [vmem:[#allocation2 + $0x88] sm:$0xff] %v201_v21  ;;  %290 = vst [vmem:[#allocation2 + $0x98] sm:$0xff] %v264_v22  ;;  %v203_v23 = vpop.f32.mrb[10].mxu0  ;;  %v266_v24 = vpop.f32.mrb[10].mxu1 }
 0x192   :  { %291 = vst [vmem:[#allocation2 + $0xa0] sm:$0xff] %v203_v23  ;;  %293 = vst [vmem:[#allocation2 + $0xb0] sm:$0xff] %v266_v24  ;;  %v205_v25 = vpop.f32.mrb[11].mxu0  ;;  %v268_v26 = vpop.f32.mrb[11].mxu1 }
 0x193   :  { %292 = vst [vmem:[#allocation2 + $0xa8] sm:$0xff] %v205_v25  ;;  %294 = vst [vmem:[#allocation2 + $0xb8] sm:$0xff] %v268_v26 }
 0x194   :  { %365 = shalt.err (!%p362_p4)
}
 0x195   :  { %s366_s17 = scalar_lea.hbm %s504_s3, 3072 }
 0x196   :  { %p367_p5 = scmp.ne.s32.totalorder %s504_s3, %s366_s17  ;;  %p370_p6 = scmp.lt.u32.totalorder %s366_s17, %s504_s3 }
 0x198   :  { %p372_p7 = pnand %p370_p6, %p367_p5 }
 0x19a   :  { %375 = shalt.err (!%p372_p7)
}
 0x19b   :  { %s380_s22 = smov 512   ;;  %s381_s23 = smov 32  }
 0x19c   :  { %306 = dma.vmem_to_hbm [thread:$0]  %s301_s13, 3072, %s504_s3, [#allocation3], %s380_s22, %s380_s22, %s381_s23  }
 0x19d   :  { %376 = dma.done.wait [#allocation3], 3072  }
 0x19e   :  { %377 = vsyncadd [#allocation3], 4294964224 }
 0x19f   :  { %310 = vsyncpa [#allocation3], 1 }

// kernel: _lambda_.3
= control target key start
LH: loop header
LB: loop body
LE: loop exit
PB: predicated region body
PF: predicated region fallthrough
CT: control target
= control target key end

     0   :  { %s2066_s25 = smov 0   ;;  %s2068_s26 = smov 0   ;;  %s2512_s0 = inlined_call_operand.vmem [shape: f32[2,32,32], index: 0, kind: input, shape index: {}]   ;;  %s2513_s1 = inlined_call_operand.vmem [shape: f32[1,32], index: 1, kind: input, shape index: {}]   ;;  %s2514_s2 = inlined_call_operand.vmem [shape: bf16[32,64], index: 2, kind: input, shape index: {}]   ;;  %s2515_s3 = inlined_call_operand.vmem [shape: bf16[32,64], index: 3, kind: input, shape index: {}]   ;;  %s2516_s4 = inlined_call_operand.vmem [shape: f32[4,64], index: 4, kind: input, shape index: {}]   ;;  %s2517_s5 = inlined_call_operand.vmem [shape: f32[1,64], index: 5, kind: input, shape index: {}]   ;;  %s2518_s6 = inlined_call_operand.vmem [shape: bf16[64,2], index: 6, kind: input, shape index: {}]   ;;  %s2519_s7 = inlined_call_operand.vmem [shape: bf16[32,64], index: 7, kind: input, shape index: {}]   ;;  %s2520_s8 = inlined_call_operand.vmem [shape: f32[2,64], index: 8, kind: input, shape index: {}]   ;;  %s2521_s9 = inlined_call_operand.vmem [shape: f32[1,64], index: 9, kind: input, shape index: {}]   ;;  %s2522_s10 = inlined_call_operand.vmem [shape: f32[16,64], index: 10, kind: input, shape index: {}]   ;;  %s2523_s11 = inlined_call_operand.vmem [shape: f32[1,64], index: 11, kind: input, shape index: {}]   ;;  %s2524_s12 = inlined_call_operand.vmem [shape: bf16[64,32], index: 12, kind: input, shape index: {}]   ;;  %s2525_s13 = inlined_call_operand.vmem [shape: f32[2,32,32], index: 13, kind: output, shape index: {}]  }
   0x1   :  { %s2070_s27 = smov 0   ;;  %s2072_s28 = smov 0  }
   0x2   :  { %s2074_s29 = smov 0  }
   0x3 LB: > { %s32_s30 = sadd.s32 1, %s1963_s27  ;;  %s35_s14 = sadd.s32 1, %s1967_s28  ;;  %s1971_s29 = sphi %s2074_s29, %s23_s29   ;;  %s1967_s28 = sphi %s2072_s28, %s2531_s28   ;;  %s1963_s27 = sphi %s2070_s27, %s2530_s27   ;;  %s1959_s26 = sphi %s2068_s26, %s2529_s26   ;;  %s1955_s25 = sphi %s2066_s25, %s2528_s25  }
   0x4   : > { %p33_p0 = scmp.ge.s32.totalorder %s32_s30, 2  ;;  %p1629_p1 = scmp.ge.s32.totalorder %s1971_s29, 1 }
   0x5   : > { %p408_p2 = scmp.lt.s32.totalorder %s1971_s29, 5 }
   0x6   : > { %s2533_s30 = smov (%p33_p0, %s32_s30), 0  ;;  %s2535_s14 = smov (!%p33_p0, %s35_s14), %s1967_s28 }
   0x7   : > { %p409_p3 = pnand %p1629_p1, %p408_p2  ;;  %p37_p4 = scmp.ge.s32.totalorder %s2535_s14, 2 }
   0x8   : > { %s1630_s15 = sshll.u32 (!%p409_p3), %s1955_s25, 1  ;;  %p461_p5 = scmp.lt.s32.totalorder (!%p409_p3), %s1959_s26, 1 }
   0x9   : > { %s2537_s14 = smov (%p37_p4, %s2535_s14), 0  ;;  %412 = sbr.rel (%p409_p3) target bundleno = 1619 (0x653), region = 72 }
   0xa   : > { %p463_p6 = scmp.lt.s32.totalorder (!%p409_p3), %s1630_s15, 3  ;;  %p1636_p7 = scmp.ne.s32.totalorder (!%p409_p3), %s1955_s25, 0 }
  0x10   : > { %s2539_s26 = smov (!%p461_p5, %s1959_s26), 1  ;;  %s2541_s15 = smov (!%p463_p6, %s1630_s15), 3 }
  0x11   : > { %s1631_s16 = sshll.u32 %s2539_s26, 2  ;;  %484 = sbr.rel (%p1636_p7) target bundleno = 24 (0x18), region = 76  ;;  %vm485_vm0 = vcmask (!%p1636_p7), 523264   ;;  %vm488_vm1 = vcmask (!%p1636_p7), 518144   ;;  %v1985_v0 = vmov (!%p1636_p7), 0.0  }
  0x12   : > { %s466_s17 = sadd.s32 %s1631_s16, %s2541_s15  ;;  %486 = vst.msk [vmem:[#allocation2] sm:$0xff] (!%p1636_p7), %vm485_vm0, %v1985_v0  ;;  %487 = vst.msk [vmem:[#allocation2 + $0x8] sm:$0xff] (!%p1636_p7), %vm485_vm0, %v1985_v0 }
  0x13   : > { %s1632_s18 = sshll.u32 %s466_s17, 3  ;;  %489 = vst.msk [vmem:[#allocation3] sm:$0x7] (!%p1636_p7), %vm488_vm1, %v1985_v0 }
  0x14   : > { %s468_s21 = scalar_lea.vmem %s2512_s0, %s1632_s18  ;;  %s2102_s24 = scalar_lea.vmem %s2525_s13, %s1632_s18 }
  0x18 PF: > { %v2104_v1 = vld [vmem:[%s468_s21] sm:$0xff]  ;;  %vm494_vm2 = vcmask 261120   ;;  %v2106_v2 = vld [vmem:[%s468_s21 + $0x8] sm:$0xff]  ;;  %v1986_v8 = vmov 0.0   ;;  %vm1987_vm3 = vmmov 0   ;;  %vm638_vm4 = vcmask 518144  }
  0x19   : > { %v492_v3 = vmul.f32 %v2104_v1, %v2104_v1  ;;  %v493_v4 = vmul.f32 %v2106_v2, %v2106_v2  ;;  %v1820_v7 = vld [vmem:[%s2514_s2] sm:$0xff]   ;;  %1693 = vmatprep.subr.bf16.mxu1 %v1986_v8  ;;  %1697 = vmatprep.mubr.msk.bf16.mxu1 %vm1987_vm3, %v1986_v8  ;;  %v1821_v9 = vld [vmem:[%s2514_s2 + $0x8] sm:$0xff]   ;;  %v1826_v29 = vld [vmem:[%s2518_s6 + $0x10] sm:$0xff]   ;;  %vm801_vm5 = vcmask 1041408   ;;  %v655_v32 = vlaneseq  ;;  %s2238_s18 = smov 0  }
  0x1a   : > { %1694 = vmatpush3.bf16.msra.mxu1 %v1820_v7  ;;  %1709 = vmatprep.subr.bf16.mxu0 %v1986_v8  ;;  %v1637_v19 = vld [vmem:[%s2513_s1] ss:$0 sm:$0xff]  ;;  %v1823_v25 = vld [vmem:[%s2515_s3 + $0x8] sm:$0xff]   ;;  %v637_v26 = vld [vmem:[#allocation3] sm:$0x7]  ;;  %vm640_vm6 = vcmask 523264  }
  0x1b   : > { %v495_v5 = vsel %vm494_vm2, %v492_v3, 0.0  ;;  %v498_v6 = vsel %vm494_vm2, %v493_v4, 0.0  ;;  %1695 = vmatprep.subr.bf16.mxu1 %v1986_v8  ;;  %1717 = vmatprep.mubr.msk.bf16.mxu0 %vm1987_vm3, %v1986_v8  ;;  %v1822_v23 = vld [vmem:[%s2515_s3] sm:$0xff]   ;;  %639 = vst.msk [vmem:[#allocation4] sm:$0x7] %vm638_vm4, %v637_v26  ;;  %v1825_v28 = vld [vmem:[%s2518_s6 + $0x8] sm:$0xff]  }
  0x1c   : > { %496 = vadd.xlane.f32.xlu0 %v495_v5  ;;  %v1824_v27 = vld [vmem:[%s2518_s6] sm:$0xff]   ;;  %v1827_v30 = vld [vmem:[%s2518_s6 + $0x18] sm:$0xff]   ;;  %v2165_v33 = vshrl.u32 %v655_v32, 7  ;;  %vm794_vm7 = vcmask 15360   ;;  %v2207_v32 = vld [vmem:[%s2522_s10 + $0x8] sm:$0xff] }
  0x1d   : > { %1710 = vmatpush3.bf16.msra.mxu0 %v1824_v27  ;;  %v786_v31 = vld [vmem:[%s2520_s8] sm:$0x3] }
  0x1e   : > { %1696 = vmatpush3.bf16.msra.mxu1 %v1821_v9  ;;  %1711 = vmatprep.subr.bf16.mxu0 %v1986_v8  ;;  %v2169_v36 = vsub.s32 0, %v2165_v33  ;;  %v645_v38 = vld [vmem:[%s2516_s4] sm:$0xf]  ;;  %v2176_v40 = vsub.s32 1, %v2165_v33  ;;  %v2180_v42 = vsub.s32 2, %v2165_v33  ;;  %v2184_v44 = vsub.s32 3, %v2165_v33 }
  0x1f   : > { %1701 = vmatprep.subr.bf16.mxu1 %v1986_v8  ;;  %v1644_v46 = vld [vmem:[%s2517_s5] ss:$0 sm:$0xff] }
  0x20   : > { %499 = vadd.xlane.f32.xlu0 %v498_v6  ;;  %v658_v41 = vrot.slane %v645_v38, %v2169_v36  ;;  %v668_v43 = vrot.slane %v645_v38, %v2176_v40  ;;  %v678_v52 = vrot.slane %v645_v38, %v2180_v42  ;;  %v688_v61 = vrot.slane %v645_v38, %v2184_v44  ;;  %v2227_v38 = vld [vmem:[%s2519_s7 + $0xc] sm:$0xf] }
  0x21   : > { %1712 = vmatpush3.bf16.msra.mxu0 %v1825_v28 }
  0x22   : > { %1713 = vmatprep.subr.bf16.mxu0 %v1986_v8 }
  0x25   : > { %1714 = vmatpush3.bf16.msra.mxu0 %v1826_v29 }
  0x26   : > { %1715 = vmatprep.subr.bf16.mxu0 %v1986_v8 }
  0x29   : > { %1716 = vmatpush3.bf16.msra.mxu0 %v1827_v30 }
  0xa9   : > { %v497_v10 = vpop.xlane.xlu0 %496 }
  0xaa   : > { %v502_v11 = vmul.f32 0.03125, %v497_v10 }
  0xac   : > { %v504_v12 = vadd.f32 1e-05, %v502_v11 }
  0xad   : > { %v500_v13 = vpop.xlane.xlu0 %499 }
  0xae   : > { %1828 = vrsqrt.f32 %v504_v12  ;;  %v503_v14 = vmul.f32 0.03125, %v500_v13 }
  0xb0   : > { %v505_v15 = vadd.f32 1e-05, %v503_v14 }
  0xb2   : > { %1830 = vrsqrt.f32 %v505_v15 }
  0xb8   : > { %v1829_v16 = vpop.eup %1828 }
  0xb9   : > { %v508_v17 = vmul.f32 %v1829_v16, %v2104_v1 }
  0xbb   : > { %v517_v21 = vmul.f32 %v1637_v19, %v508_v17 }
  0xbc   : > { %v1831_v18 = vpop.eup %1830 }
  0xbd   : > { %v509_v20 = vmul.f32 %v1831_v18, %v2106_v2 }
  0xbf   : > { %v518_v22 = vmul.f32 %v1637_v19, %v509_v20 }
  0xc1   : > { %v519_v24 = vpack.c.bf16 %v518_v22, %v517_v21 }
  0xc3   : > { %1698 = vmatmul.mubr.msk.bf16.vlgmr.msra.gmra.mrb[0].mxu1 %vm494_vm2, %v519_v24 }
  0xc4   : > { %1702 = vmatpush3.bf16.msra.mxu1 %v1822_v23  ;;  %1705 = vmatprep.mubr.msk.bf16.mxu1 %vm1987_vm3, %v1986_v8 }
  0xc5   : > { %1703 = vmatprep.subr.bf16.mxu1 %v1986_v8 }
  0xc8   : > { %1704 = vmatpush3.bf16.msra.mxu1 %v1823_v25 }
  0xc9   : > { %1721 = vmatprep.subr.msk.mxu1 %vm801_vm5, %v786_v31 }
  0xcb   : > { %1706 = vmatmul.mubr.msk.bf16.vlgmr.msra.gmra.mrb[4].mxu1 %vm494_vm2, %v519_v24 }
  0xcc   : > { %1722 = vmatpush3.msk.msra.mxu1 %vm801_vm5, %v786_v31  ;;  %v2202_v31 = vld [vmem:[%s2522_s10] sm:$0xff] }
 0x196   : > { %v573_v34 = vpop.f32.mrb[0].mxu1 }
 0x197   : > { %641 = vst.msk [vmem:[#allocation4 + $0x3] sm:$0xff] %vm640_vm6, %v573_v34  ;;  %v1699_v35 = vpop.f32.mrb[1].mxu1  ;;  %v2212_v34 = vld [vmem:[%s2519_s7] sm:$0xf] }
 0x198   : > { %v576_v37 = vpop.f32.mrb[2].mxu1  ;;  %v2217_v35 = vld [vmem:[%s2519_s7 + $0x4] sm:$0xf] }
 0x199   : > { %642 = vst.msk [vmem:[#allocation4 + $0xb] sm:$0xff] %vm640_vm6, %v576_v37  ;;  %v1700_v39 = vpop.f32.mrb[3].mxu1  ;;  %v2222_v37 = vld [vmem:[%s2519_s7 + $0x8] sm:$0xf] }
 0x19a   : > { %v924_v39 = vld [vmem:[#allocation2] sm:$0xff]  }
 0x19e   : > { %v2186_v45 = vpop.f32.mrb[4].mxu1  ;;  %v653_v47 = vld [vmem:[#allocation4] sm:$0xff] }
 0x19f   : > { %v663_v48 = vld [vmem:[#allocation4 + $0x1] sm:$0xff]  ;;  %v1707_v49 = vpop.f32.mrb[5].mxu1  ;;  %v659_v50 = vmul.f32 %v658_v41, %v653_v47 }
 0x1a0   : > { %v673_v51 = vld [vmem:[#allocation4 + $0x2] sm:$0xff]  ;;  %v643_v53 = vld [vmem:[#allocation4 + $0x10] sm:$0x7]  ;;  %v2192_v54 = vpop.f32.mrb[6].mxu1  ;;  %v669_v60 = vmul.f32 %v668_v43, %v663_v48 }
 0x1a1   : > { %v654_v55 = vld [vmem:[#allocation4 + $0x8] sm:$0xff]  ;;  %644 = vst.msk [vmem:[#allocation3] sm:$0x7] %vm638_vm4, %v643_v53  ;;  %v1708_v57 = vpop.f32.mrb[7].mxu1  ;;  %v661_v59 = vadd.f32 %v1644_v46, %v659_v50  ;;  %v679_v5 = vmul.f32 %v678_v52, %v673_v51 }
 0x1a2   : > { %v664_v56 = vld [vmem:[#allocation4 + $0x9] sm:$0xff]  ;;  %v660_v58 = vmul.f32 %v658_v41, %v654_v55  ;;  %v925_v41 = vld [vmem:[#allocation2 + $0x8] sm:$0xff]  }
 0x1a3   : > { %v674_v62 = vld [vmem:[#allocation4 + $0xa] sm:$0xff]  ;;  %v670_v3 = vmul.f32 %v668_v43, %v664_v56  ;;  %v671_v4 = vadd.f32 %v669_v60, %v661_v59 }
 0x1a4   : > { %v683_v63 = vld [vmem:[#allocation4 + $0x3] sm:$0xff]  ;;  %v662_v0 = vadd.f32 %v1644_v46, %v660_v58  ;;  %v684_v6 = vld [vmem:[#allocation4 + $0xb] sm:$0xff]  ;;  %v680_v9 = vmul.f32 %v678_v52, %v674_v62 }
 0x1a5   : > { %v681_v10 = vadd.f32 %v679_v5, %v671_v4  ;;  %v689_v11 = vmul.f32 %v688_v61, %v683_v63  ;;  %v690_v13 = vmul.f32 %v688_v61, %v684_v6  ;;  %v1652_v43 = vld [vmem:[%s2521_s9] ss:$0 sm:$0xff] }
 0x1a6   : > { %v672_v7 = vadd.f32 %v670_v3, %v662_v0 }
 0x1a7   : > { %v691_v14 = vadd.f32 %v689_v11, %v681_v10 }
 0x1a8   : > { %v682_v12 = vadd.f32 %v680_v9, %v672_v7 }
 0x1a9   : > { %v1645_v16 = vmul.f32 -1.442695, %v691_v14 }
 0x1aa   : > { %v692_v15 = vadd.f32 %v690_v13, %v682_v12 }
 0x1ab   : > { %1832 = vpow2.f32 %v1645_v16 }
 0x1ac   : > { %v1646_v17 = vmul.f32 -1.442695, %v692_v15 }
 0x1ae   : > { %1834 = vpow2.f32 %v1646_v17 }
 0x1b5   : > { %v1833_v18 = vpop.eup %1832 }
 0x1b6   : > { %v699_v19 = vadd.f32 1.0, %v1833_v18 }
 0x1b8   : > { %v1835_v20 = vpop.eup %1834  ;;  %1836 = vrcp.f32 %v699_v19 }
 0x1b9   : > { %v700_v21 = vadd.f32 1.0, %v1835_v20 }
 0x1bb   : > { %1838 = vrcp.f32 %v700_v21 }
 0x1c2   : > { %v1837_v22 = vpop.eup %1836 }
 0x1c3   : > { %v705_v23 = vmul.f32 %v1837_v22, %v691_v14 }
 0x1c5   : > { %v1839_v24 = vpop.eup %1838  ;;  %707 = vst.msk [vmem:[#allocation6] sm:$0xff] %vm640_vm6, %v705_v23 }
 0x1c6   : > { %v706_v25 = vmul.f32 %v1839_v24, %v692_v15 }
 0x1c8   : > { %708 = vst.msk [vmem:[#allocation6 + $0x8] sm:$0xff] %vm640_vm6, %v706_v25  ;;  %v709_v26 = vpack.c.bf16 %v706_v25, %v705_v23 }
 0x1ca   : > { %1718 = vmatmul.mubr.msk.bf16.vlgmr.msra.gmra.mrb[0].mxu0 %vm640_vm6, %v709_v26 }
 0x29d   : > { %v779_v27 = vpop.f32.mrb[0].mxu0 }
 0x29e   : > { %v1719_v28 = vpop.f32.mrb[1].mxu0  ;;  %1723 = vmatprep.mubr.msk.f32.mxu1 %vm794_vm7, %v779_v27 }
 0x29f   : > { %v782_v29 = vpop.f32.mrb[2].mxu0 }
 0x2a0   : > { %v1720_v30 = vpop.f32.mrb[3].mxu0  ;;  %1724 = vmatmul.mubr.msk.f32.vlgmr.msra.gmra.mrb[8].mxu1 %vm794_vm7, %v782_v29 }
 0x373   : > { %v1725_v46 = vpop.f32.mrb[8].mxu1 }
 0x374   : > { %v877_v47 = vadd.f32 %v1725_v46, %v1652_v43  ;;  %v871_v48 = vpop.f32.mrb[9].mxu1 }
 0x375   : > { %v872_v49 = vadd.f32 %v1652_v43, %v871_v48 }
 0x376   : > { %v887_v50 = vand.u32 2147483647, %v877_v47  ;;  %v881_v10 = vmax.f32 %v877_v47, 0.0  ;;  %vm883_vm10 = vcmp.ne.f32.partialorder %v877_v47, %v877_v47 }
 0x377   : > { %v886_v51 = vand.u32 2147483647, %v872_v49  ;;  %v880_v14 = vmax.f32 %v872_v49, 0.0  ;;  %vm882_vm11 = vcmp.ne.f32.partialorder %v872_v49, %v872_v49 }
 0x378   : > { %v889_v52 = vsub.f32 0.0, %v887_v50 }
 0x379   : > { %v888_v53 = vsub.f32 0.0, %v886_v51 }
 0x37a   : > { %v892_v55 = vmul.f32 1.442695, %v889_v52 }
 0x37b   : > { %v890_v56 = vmul.f32 1.442695, %v888_v53 }
 0x37c   : > { %1840 = vpow2.f32 %v892_v55 }
 0x37d   : > { %1842 = vpow2.f32 %v890_v56 }
 0x386   : > { %v1841_v57 = vpop.eup %1840 }
 0x387   : > { %v1843_v58 = vpop.eup %1842  ;;  %v903_v59 = vadd.f32 1.0, %v1841_v57  ;;  %v906_v61 = vmul.f32 -0.5, %v1841_v57  ;;  %v909_v0 = vand.u32 2147483647, %v1841_v57 }
 0x388   : > { %v894_v60 = vadd.f32 1.0, %v1843_v58  ;;  %v897_v62 = vmul.f32 -0.5, %v1843_v58  ;;  %v900_v4 = vand.u32 2147483647, %v1843_v58 }
 0x389   : > { %1844 = vlog2.f32 %v903_v59  ;;  %v907_v63 = vadd.f32 1.0, %v906_v61  ;;  %vm910_vm8 = vcmp.lt.f32.partialorder %v909_v0, 0.0004427343 }
 0x38a   : > { %1846 = vlog2.f32 %v894_v60  ;;  %v898_v3 = vadd.f32 1.0, %v897_v62  ;;  %vm901_vm9 = vcmp.lt.f32.partialorder %v900_v4, 0.0004427343 }
 0x38b   : > { %v908_v9 = vmul.f32 %v1841_v57, %v907_v63 }
 0x38c   : > { %v899_v12 = vmul.f32 %v1843_v58, %v898_v3 }
 0x393   : > { %v1845_v5 = vpop.eup %1844 }
 0x394   : > { %v1847_v6 = vpop.eup %1846  ;;  %v905_v7 = vmul.f32 0.6931472, %v1845_v5 }
 0x395   : > { %v896_v11 = vmul.f32 0.6931472, %v1847_v6 }
 0x396   : > { %v911_v13 = vsel %vm910_vm8, %v908_v9, %v905_v7 }
 0x397   : > { %v913_v15 = vadd.f32 %v911_v13, %v881_v10  ;;  %v902_v16 = vsel %vm901_vm9, %v899_v12, %v896_v11 }
 0x398   : > { %v912_v17 = vadd.f32 %v902_v16, %v880_v14 }
 0x399   : > { %v915_v18 = vsel %vm883_vm10, %v877_v47, %v913_v15 }
 0x39a   : > { %917 = vst.msk [vmem:[#allocation5 + $0x8] sm:$0xff] %vm640_vm6, %v915_v18  ;;  %v914_v19 = vsel %vm882_vm11, %v872_v49, %v912_v17 }
 0x39b   : > { %916 = vst.msk [vmem:[#allocation5] sm:$0xff] %vm640_vm6, %v914_v19 }
 0x39c LB: >> { %v1657_v20 = vcombine.low %v2212_v34, %v2217_v35  ;;  %v1988_v21 = vmov 1   ;;  %v1989_v22 = vmov 0   ;;  %s2253_s19 = sshll.u32 %s1983_s18, 3  ;;  %v1658_v28 = vcombine.low %v2222_v37, %v2227_v38  ;;  %s931_s18 = sadd.s32 1, %s1983_s18   ;;  %s1983_s18 = sphi %s2238_s18, %s931_s18   ;;  %v1979_v39 = vphi %v924_v39, %v2527_v39   ;;  %v1975_v41 = vphi %v925_v41, %v2526_v41  }
 0x39d   : >> { %1849 = vset.pattern.permute.xlu0 %v1988_v21  ;;  %1848 = vset.pattern.permute.xlu1 %v1989_v22  ;;  %s935_s20 = scalar_lea.vmem [#allocation5], %s2253_s19  ;;  %s937_s21 = scalar_lea.vmem [#allocation6], %s2253_s19  ;;  %v1990_v47 = vmov 2   ;;  %v1991_v48 = vmov 3   ;;  %v1992_v49 = vmov 4   ;;  %v1993_v50 = vmov 5  }
 0x39e   : >> { %1728 = vmatprep.mubr.msk.bf16.mxu0 %vm640_vm6, %v1657_v20  ;;  %v938_v24 = vld [vmem:[%s937_s21] sm:$0xff]  ;;  %v1994_v51 = vmov 6   ;;  %v1995_v52 = vmov 7   ;;  %v1203_v13 = vsub.s32 4, %v2165_v33  ;;  %v1250_v17 = vsub.s32 5, %v2165_v33  ;;  %s1402_s22 = scalar_lea.vmem [#allocation7], %s2253_s19 }
 0x39f   : >> { %v940_v26 = vpack.c.bf16 %v938_v24, %v938_v24  ;;  %vm1389_vm12 = vcmask 1040384   ;;  %vm1392_vm13 = vcmask 1042432   ;;  %vm1394_vm14 = vcmask 1043456   ;;  %p928_p8 = scmp.ge.s32.totalorder %s931_s18, 2  }
 0x3a0   : >> { %vm1396_vm15 = vcmask 1044480   ;;  %vm1398_vm0 = vcmask 1045504   ;;  %vm1400_vm1 = vcmask 1046528   ;;  %v1408_v35 = vld [vmem:[#allocation6] sm:$0xff] (%p928_p8)  ;;  %v1409_v38 = vld [vmem:[#allocation6 + $0x8] sm:$0xff] (%p928_p8) }
 0x3a1   : >> { %1744 = vmatprep.subr.msk.bf16.mxu0 %vm640_vm6, %v940_v26  ;;  %v958_v27 = vsel %vm640_vm6, %v940_v26, 0  ;;  %v1661_v37 = vld [vmem:[%s2523_s11] ss:$0 sm:$0xff] (%p928_p8) }
 0x3a2   : >> { %v2257_v23 = vld [vmem:[%s935_s20] sm:$0xff]  ;;  %1727 = vmatpush3.bf16.xpose.msra.mxu0 %v958_v27 }
 0x3a3   : >> { %v2261_v25 = vmul.f32 %v938_v24, %v2257_v23  ;;  %v1012_v53 = vrot.slane %v2257_v23, %v2169_v36  ;;  %v1063_v56 = vrot.slane %v2257_v23, %v2176_v40  ;;  %v2289_v59 = vrot.slane %v2257_v23, %v2180_v42  ;;  %1732 = vmatprep.subr.bf16.mxu0 (%p928_p8), %v1986_v8 }
 0x3a4   : >> { %v2302_v9 = vrot.slane %v2257_v23, %v2184_v44 }
 0x3a5   : >> { %v1013_v55 = vmul.f32 %v1012_v53, %v2202_v31  ;;  %v1064_v58 = vmul.f32 %v1063_v56, %v2202_v31  ;;  %v1111_v61 = vmul.f32 %v2289_v59, %v2202_v31  ;;  %v2297_v4 = vrot.slane %v2261_v25, %v2169_v36 }
 0x3a6   : >> { %v2307_v12 = vrot.slane %v2261_v25, %v2176_v40  ;;  %v1014_v15 = vmul.f32 %v1012_v53, %v2207_v32  ;;  %v1158_v16 = vmul.f32 %v2302_v9, %v2202_v31  ;;  %v1344_v53 = vsub.s32 7, %v2165_v33  ;;  %v1911_v40 = vld [vmem:[%s2524_s12 + $0x10] sm:$0xff] (%p928_p8)  }
 0x3a7   : >> { %v1015_v57 = vmul.f32 1.442695, %v1013_v55  ;;  %v1066_v60 = vmul.f32 1.442695, %v1064_v58  ;;  %v1113_v62 = vmul.f32 1.442695, %v1111_v61 }
 0x3a8   : >> { %v1017_v26 = vmul.f32 1.442695, %v1014_v15  ;;  %v2358_v15 = vrot.slane %v2261_v25, %v2184_v44  ;;  %v1663_v36 = vmul.f32 (%p928_p8), -1.442695, %v2192_v54 }
 0x3a9   : >> { %1729 = vmatmul.mubr.msk.bf16.vlgmr.msra.gmra.mrb[0].mxu0 %vm640_vm6, %v1658_v28  ;;  %1877 = vpow2.f32 %v1015_v57 }
 0x3aa   : >> { %1879 = vpow2.f32 %v1066_v60  ;;  %v2344_v60 = vrot.slane %v2261_v25, %v2180_v42  ;;  %1740 = vmatprep.mubr.msk.bf16.mxu0 (%p928_p8), %vm1987_vm3, %v1986_v8  ;;  %v1912_v42 = vld [vmem:[%s2524_s12 + $0x18] sm:$0xff] (%p928_p8)  }
 0x3ab   : >> { %1881 = vpow2.f32 %v1113_v62  ;;  %v2349_v62 = vrot.slane %v2257_v23, %v1344_v53 }
 0x3ac   : >> { %1883 = vpow2.f32 %v1017_v26 }
 0x3b3   : >> { %v1878_v3 = vpop.eup %1877 }
 0x3b4   : >> { %v1019_v5 = vmul.f32 %v1979_v39, %v1878_v3  ;;  %v1880_v11 = vpop.eup %1879  ;;  %v2312_v39 = vrot.slane %v2257_v23, %v1203_v13 }
 0x3b5   : >> { %v1882_v24 = vpop.eup %1881 }
 0x3b6   : >> { %v1205_v28 = vmul.f32 %v2312_v39, %v2202_v31 }
 0x47c   : >> { %v2268_v29 = vpop.f32.mrb[0].mxu0 }
 0x47d   : >> { %1089 = vperm.xlu0 %1849, %v2268_v29   ;;  %1041 = vperm.xlu1 %1848, %v2268_v29   ;;  %v994_v30 = vpop.f32.mrb[1].mxu0 }
 0x47e   : >> { %v1731_v43 = vpop.f32.mrb[2].mxu0 }
 0x47f   : >> { %v997_v46 = vpop.f32.mrb[3].mxu0 }
 0x481   : >> { %1854 = vset.pattern.permute.xlu0 %v1989_v22  ;;  %1850 = vset.pattern.permute.xlu1 %v1990_v47 }
 0x482   : >> { %1136 = vperm.xlu1 %1850, %v2268_v29   ;;  %1023 = vperm.xlu0 %1854, %v994_v30  }
 0x486   : >> { %1851 = vset.pattern.permute.xlu1 %v1991_v48  ;;  %1855 = vset.pattern.permute.xlu0 %v1988_v21 }
 0x487   : >> { %1183 = vperm.xlu1 %1851, %v2268_v29   ;;  %1073 = vperm.xlu0 %1855, %v994_v30  }
 0x48b   : >> { %1852 = vset.pattern.permute.xlu1 %v1992_v49  ;;  %1858 = vset.pattern.permute.xlu0 %v1992_v49 }
 0x48c   : >> { %1230 = vperm.xlu1 %1852, %v2268_v29   ;;  %1214 = vperm.xlu0 %1858, %v994_v30  }
 0x490   : >> { %1853 = vset.pattern.permute.xlu1 %v1993_v50  ;;  %1863 = vset.pattern.permute.xlu0 %v1990_v47 }
 0x491   : >> { %1277 = vperm.xlu1 %1853, %v2268_v29   ;;  %1140 = vperm.xlu0 %1863, %v1731_v43  }
 0x495   : >> { %1856 = vset.pattern.permute.xlu1 %v1990_v47  ;;  %1865 = vset.pattern.permute.xlu0 %v1992_v49 }
 0x496   : >> { %1120 = vperm.xlu1 %1856, %v994_v30   ;;  %1234 = vperm.xlu0 %1865, %v1731_v43  }
 0x49a   : >> { %1857 = vset.pattern.permute.xlu1 %v1991_v48  ;;  %1866 = vset.pattern.permute.xlu0 %v1989_v22 }
 0x49b   : >> { %1167 = vperm.xlu1 %1857, %v994_v30   ;;  %1028 = vperm.xlu0 %1866, %v997_v46  }
 0x49f   : >> { %1859 = vset.pattern.permute.xlu1 %v1993_v50  ;;  %1869 = vset.pattern.permute.xlu0 %v1990_v47 }
 0x4a0   : >> { %1261 = vperm.xlu1 %1859, %v994_v30   ;;  %1124 = vperm.xlu0 %1869, %v997_v46  }
 0x4a4   : >> { %1860 = vset.pattern.permute.xlu1 %v1994_v51  ;;  %1870 = vset.pattern.permute.xlu0 %v1994_v51 }
 0x4a5   : >> { %1308 = vperm.xlu1 %1860, %v994_v30   ;;  %1324 = vperm.xlu0 %1870, %v2268_v29  }
 0x4a9   : >> { %1861 = vset.pattern.permute.xlu1 %v1989_v22  ;;  %1873 = vset.pattern.permute.xlu0 %v1993_v50 }
 0x4aa   : >> { %1046 = vperm.xlu1 %1861, %v1731_v43   ;;  %1265 = vperm.xlu0 %1873, %v997_v46  }
 0x4ae   : >> { %1862 = vset.pattern.permute.xlu1 %v1988_v21  ;;  %1874 = vset.pattern.permute.xlu0 %v1995_v52 }
 0x4af   : >> { %1093 = vperm.xlu1 %1862, %v1731_v43   ;;  %1355 = vperm.xlu0 %1874, %v994_v30   ;;  %v2325_v30 = vrot.slane %v2257_v23, %v1250_v17 }
 0x4b3   : >> { %1864 = vset.pattern.permute.xlu1 %v1991_v48  ;;  %1375 = vperm.xlu0 %1874, %v1731_v43  }
 0x4b4   : >> { %1187 = vperm.xlu1 %1864, %v1731_v43  }
 0x4b8   : >> { %1867 = vset.pattern.permute.xlu1 %v1988_v21 }
 0x4b9   : >> { %1077 = vperm.xlu1 %1867, %v997_v46  }
 0x4bd   : >> { %1868 = vset.pattern.permute.xlu1 %v1993_v50  ;;  %v1207_v50 = vmul.f32 1.442695, %v1205_v28 }
 0x4be   : >> { %1281 = vperm.xlu1 %1868, %v1731_v43  }
 0x4c2   : >> { %1871 = vset.pattern.permute.xlu1 %v1991_v48 }
 0x4c3   : >> { %1171 = vperm.xlu1 %1871, %v997_v46  }
 0x4c7   : >> { %1872 = vset.pattern.permute.xlu1 %v1992_v49 }
 0x4c8   : >> { %1218 = vperm.xlu1 %1872, %v997_v46  }
 0x4cc   : >> { %1875 = vset.pattern.permute.xlu1 %v1994_v51  ;;  %v1252_v51 = vmul.f32 %v2325_v30, %v2202_v31 }
 0x4cd   : >> { %1328 = vperm.xlu1 %1875, %v1731_v43   ;;  %v1297_v43 = vsub.s32 6, %v2165_v33  ;;  %v1662_v33 = vmul.f32 (%p928_p8), -1.442695, %v2186_v45 }
 0x4ce   : >> { %v1254_v58 = vmul.f32 1.442695, %v1252_v51 }
 0x4d1   : >> { %1312 = vperm.xlu1 %1875, %v997_v46  }
 0x4d5   : >> { %1876 = vset.pattern.permute.xlu1 %v1995_v52  ;;  %v2335_v52 = vrot.slane %v2257_v23, %v1297_v43 }
 0x4d6   : >> { %1359 = vperm.xlu1 %1876, %v997_v46   ;;  %v1065_v46 = vmul.f32 %v1063_v56, %v2207_v32 }
 0x4d7   : >> { %v1299_v61 = vmul.f32 %v2335_v52, %v2202_v31 }
 0x4d8   : >> { %v1068_v55 = vmul.f32 1.442695, %v1065_v46 }
 0x4da   : >> { %1371 = vperm.xlu1 %1876, %v2268_v29   ;;  %v1160_v29 = vmul.f32 1.442695, %v1158_v16 }
 0x4dc   : >> { %1885 = vpow2.f32 %v1160_v29  ;;  %v2364_v29 = vrot.slane %v2261_v25, %v1203_v13 }
 0x4dd   : >> { %1887 = vpow2.f32 %v1207_v50 }
 0x4de   : >> { %1889 = vpow2.f32 %v1068_v55 }
 0x4df   : >> { %1891 = vpow2.f32 %v1254_v58 }
 0x4fc   : >> { %v2293_v63 = vpop.permute.xlu0 %1089  ;;  %v1042_v0 = vpop.permute.xlu1 %1041 }
 0x501   : >> { %v1137_v6 = vpop.permute.xlu1 %1136  ;;  %v1024_v7 = vpop.permute.xlu0 %1023 }
 0x502   : >> { %v1035_v10 = vmul.f32 %v2297_v4, %v1024_v7 }
 0x504   : >> { %v1037_v14 = vadd.f32 %v1035_v10, %v1019_v5  ;;  %v1884_v5 = vpop.eup %1883  ;;  %v1301_v10 = vmul.f32 1.442695, %v1299_v61 }
 0x505   : >> { %v1020_v23 = vmul.f32 %v1975_v41, %v1884_v5  ;;  %v2369_v41 = vrot.slane %v2261_v25, %v1250_v17 }
 0x506   : >> { %v1184_v18 = vpop.permute.xlu1 %1183  ;;  %v1074_v19 = vpop.permute.xlu0 %1073  ;;  %v1070_v20 = vmul.f32 %v1880_v11, %v1037_v14  ;;  %v2317_v21 = vmul.f32 %v1042_v0, %v1037_v14  ;;  %v1346_v11 = vmul.f32 %v2349_v62, %v2202_v31  ;;  %1893 = vpow2.f32 %v1301_v10 }
 0x507   : >> { %v1084_v22 = vmul.f32 %v2307_v12, %v1074_v19  ;;  %v1886_v14 = vpop.eup %1885 }
 0x508   : >> { %v1348_v26 = vmul.f32 1.442695, %v1346_v11  ;;  %v1888_v28 = vpop.eup %1887 }
 0x509   : >> { %v2320_v27 = vadd.f32 %v1084_v22, %v1070_v20  ;;  %v1890_v51 = vpop.eup %1889 }
 0x50a   : >> { %1895 = vpow2.f32 %v1348_v26 }
 0x50b   : >> { %v2329_v47 = vpop.permute.xlu1 %1230  ;;  %v1215_v48 = vpop.permute.xlu0 %1214  ;;  %v1117_v49 = vmul.f32 %v1882_v24, %v2320_v27 }
 0x50c   : >> { %v1225_v58 = vmul.f32 %v2364_v29, %v1215_v48 }
 0x510   : >> { %v2338_v57 = vpop.permute.xlu1 %1277  ;;  %v2340_v56 = vpop.permute.xlu0 %1140 }
 0x515   : >> { %v1121_v0 = vpop.permute.xlu1 %1120  ;;  %v2351_v3 = vpop.permute.xlu0 %1234 }
 0x516   : >> { %v1131_v7 = vmul.f32 %v2344_v60, %v1121_v0 }
 0x518   : >> { %v1133_v16 = vadd.f32 %v1131_v7, %v1117_v49 }
 0x51a   : >> { %v2361_v19 = vmul.f32 %v1137_v6, %v1133_v16  ;;  %v1168_v20 = vpop.permute.xlu1 %1167  ;;  %v1164_v22 = vmul.f32 %v1886_v14, %v1133_v16  ;;  %v1029_v24 = vpop.permute.xlu0 %1028  ;;  %v2379_v14 = vrot.slane %v2261_v25, %v1297_v43 }
 0x51b   : >> { %v1178_v46 = vmul.f32 %v2358_v15, %v1168_v20  ;;  %v1036_v50 = vmul.f32 %v2297_v4, %v1029_v24  ;;  %v1892_v6 = vpop.eup %1891  ;;  %v1112_v24 = vmul.f32 %v2289_v59, %v2207_v32  ;;  %v1159_v59 = vmul.f32 %v2302_v9, %v2207_v32 }
 0x51c   : >> { %v1894_v17 = vpop.eup %1893 }
 0x51d   : >> { %v1180_v55 = vadd.f32 %v1178_v46, %v1164_v22  ;;  %v1038_v49 = vadd.f32 %v1036_v50, %v1020_v23  ;;  %v1896_v22 = vpop.eup %1895  ;;  %v2394_v50 = vrot.slane %v2261_v25, %v1344_v53  ;;  %v1206_v53 = vmul.f32 %v2312_v39, %v2207_v32 }
 0x51e   : >> { %v1300_v39 = vmul.f32 %v2335_v52, %v2207_v32 }
 0x51f   : >> { %v2372_v61 = vmul.f32 %v1184_v18, %v1180_v55  ;;  %v1211_v0 = vmul.f32 %v1888_v28, %v1180_v55  ;;  %v1262_v5 = vpop.permute.xlu1 %1261  ;;  %v1125_v13 = vpop.permute.xlu0 %1124  ;;  %v1071_v7 = vmul.f32 %v1890_v51, %v1038_v49  ;;  %v1051_v55 = vsel %vm640_vm6, %v2317_v21, 0.0 }
 0x520   : >> { %v1272_v11 = vmul.f32 %v2369_v41, %v1262_v5  ;;  %v1209_v21 = vmul.f32 1.442695, %v1206_v53 }
 0x521   : >> { %v2374_v10 = vadd.f32 %v1225_v58, %v1211_v0  ;;  %v1115_v58 = vmul.f32 1.442695, %v1112_v24  ;;  %v1096_v24 = vmul.f32 %v2293_v63, %v2320_v27  ;;  %v1303_v63 = vmul.f32 1.442695, %v1300_v39 }
 0x522   : >> { %v1347_v27 = vmul.f32 %v2349_v62, %v2207_v32 }
 0x523   : >> { %v1258_v4 = vmul.f32 %v1892_v6, %v2374_v10  ;;  %1897 = vpow2.f32 %v1115_v58 }
 0x524   : >> { %v1309_v16 = vpop.permute.xlu1 %1308  ;;  %v2381_v23 = vpop.permute.xlu0 %1324 }
 0x525   : >> { %v2383_v48 = vadd.f32 %v1272_v11, %v1258_v4  ;;  %v1319_v18 = vmul.f32 %v2379_v14, %v1309_v16 }
 0x527   : >> { %v1305_v20 = vmul.f32 %v1894_v17, %v2383_v48 }
 0x529   : >> { %v2389_v26 = vadd.f32 %v1319_v18, %v1305_v20  ;;  %v1047_v28 = vpop.permute.xlu1 %1046  ;;  %v2391_v46 = vpop.permute.xlu0 %1265  ;;  %v1253_v18 = vmul.f32 %v2325_v30, %v2207_v32 }
 0x52a   : >> { %v1050_v43 = vmul.f32 %v1047_v28, %v1038_v49  ;;  %v1162_v49 = vmul.f32 1.442695, %v1159_v59 }
 0x52b   : >> { %v1352_v51 = vmul.f32 %v1896_v22, %v2389_v26 }
 0x52c   : >> { %v1052_v6 = vsel %vm640_vm6, %v1050_v43, 0.0  ;;  %1899 = vpow2.f32 %v1162_v49 }
 0x52d   : >> { %v1053_v0 = vadd.f32 %v1052_v6, %v1051_v55  ;;  %v1898_v22 = vpop.eup %1897  ;;  %1901 = vpow2.f32 %v1209_v21  ;;  %v1132_v55 = vmul.f32 %v2344_v60, %v1125_v13 }
 0x52e   : >> { %v1094_v5 = vpop.permute.xlu1 %1093  ;;  %v1356_v4 = vpop.permute.xlu0 %1355 }
 0x52f   : >> { %v1366_v11 = vmul.f32 %v2394_v50, %v1356_v4  ;;  %v1054_v16 = vrot.slane %v1053_v0, 4 }
 0x531   : >> { %v2403_v25 = vadd.f32 %v1366_v11, %v1352_v51   ;;  %v1055_v28 = vadd.f32 %v1054_v16, %v1053_v0  ;;  %v1256_v51 = vmul.f32 1.442695, %v1253_v18 }
 0x533   : >> { %v1188_v17 = vpop.permute.xlu1 %1187  ;;  %v1056_v4 = vrot.slane %v1055_v28, 2  ;;  %1903 = vpow2.f32 %v1256_v51  ;;  %1404 = vst.msk [vmem:[#allocation2] sm:$0xff] (%p928_p8), %vm640_vm6, %v2403_v25 }
 0x534   : >> { %1905 = vpow2.f32 %v1303_v63 }
 0x535   : >> { %v1057_v53 = vadd.f32 %v1056_v4, %v1055_v28 }
 0x536   : >> { %v1900_v30 = vpop.eup %1899 }
 0x537   : >> { %v1902_v18 = vpop.eup %1901 }
 0x538   : >> { %v1078_v9 = vpop.permute.xlu1 %1077 }
 0x539   : >> { %v1085_v20 = vmul.f32 %v2307_v12, %v1078_v9  ;;  %v1098_v12 = vsel %vm640_vm6, %v1096_v24, 0.0  ;;  %v1350_v9 = vmul.f32 1.442695, %v1347_v27 }
 0x53b   : >> { %v1087_v43 = vadd.f32 %v1085_v20, %v1071_v7  ;;  %1907 = vpow2.f32 %v1350_v9 }
 0x53c   : > { %1913 = vpow2.f32 (%p928_p8), %v1662_v33 }
 0x53d   : >> { %v1097_v6 = vmul.f32 %v1094_v5, %v1087_v43  ;;  %v1118_v58 = vmul.f32 %v1898_v22, %v1087_v43  ;;  %v2415_v59 = vpop.permute.xlu1 %1281  ;;  %v1145_v5 = vsel %vm640_vm6, %v2361_v19, 0.0  ;;  %1915 = vpow2.f32 (%p928_p8), %v1663_v36 }
 0x53f   : >> { %v1099_v11 = vsel %vm640_vm6, %v1097_v6, 0.0  ;;  %v1134_v49 = vadd.f32 %v1132_v55, %v1118_v58 }
 0x540   : >> { %v1100_v7 = vadd.f32 %v1099_v11, %v1098_v12  ;;  %v1904_v12 = vpop.eup %1903 }
 0x541   : >> { %v1144_v52 = vmul.f32 %v2340_v56, %v1134_v49  ;;  %v1165_v60 = vmul.f32 %v1900_v30, %v1134_v49  ;;  %v1058_v56 = vrot.slane %v1057_v53, 1  ;;  %v1237_v30 = vmul.f32 %v2329_v47, %v2374_v10 }
 0x542   : >> { %v1101_v13 = vrot.slane %v1100_v7, 4  ;;  %v1172_v0 = vpop.permute.xlu1 %1171 }
 0x543   : >> { %v1146_v21 = vsel %vm640_vm6, %v1144_v52, 0.0  ;;  %v1179_v16 = vmul.f32 %v2358_v15, %v1172_v0  ;;  %v1192_v15 = vsel %vm640_vm6, %v2372_v61, 0.0  ;;  %v1059_v63 = vadd.f32 %v1058_v56, %v1057_v53  ;;  %v1906_v0 = vpop.eup %1905 }
 0x544   : >> { %v1102_v20 = vadd.f32 %v1101_v13, %v1100_v7  ;;  %v1147_v22 = vadd.f32 %v1146_v21, %v1145_v5  ;;  %v1284_v61 = vmul.f32 %v2338_v57, %v2383_v48  ;;  %v1273_v13 = vmul.f32 %v2369_v41, %v2391_v46 }
 0x545   : >> { %v1181_v62 = vadd.f32 %v1179_v16, %v1165_v60  ;;  %v1239_v47 = vsel %vm640_vm6, %v1237_v30, 0.0  ;;  %v1908_v46 = vpop.eup %1907 }
 0x546   : >> { %v1103_v24 = vrot.slane %v1102_v20, 2  ;;  %v1148_v43 = vrot.slane %v1147_v22, 4  ;;  %v1914_v44 = vpop.eup (%p928_p8), %1913 }
 0x547   : >> { %v1191_v51 = vmul.f32 %v1188_v17, %v1181_v62  ;;  %v1219_v39 = vpop.permute.xlu1 %1218  ;;  %v1212_v55 = vmul.f32 %v1902_v18, %v1181_v62  ;;  %v1916_v31 = vpop.eup (%p928_p8), %1915  ;;  %v1427_v32 = vadd.f32 (%p928_p8), 1.0, %v1914_v44 }
 0x548   : >> { %v1104_v6 = vadd.f32 %v1103_v24, %v1102_v20  ;;  %v1149_v19 = vadd.f32 %v1148_v43, %v1147_v22  ;;  %v1226_v28 = vmul.f32 %v2364_v29, %v1219_v39  ;;  %v1286_v24 = vsel %vm640_vm6, %v1284_v61, 0.0 }
 0x549   : >> { %v1193_v58 = vsel %vm640_vm6, %v1191_v51, 0.0  ;;  %v1331_v51 = vmul.f32 %v2381_v23, %v2389_v26  ;;  %v1428_v34 = vadd.f32 (%p928_p8), 1.0, %v1916_v31  ;;  %1917 = vrcp.f32 (%p928_p8), %v1427_v32 }
 0x54a   : >> { %v1105_v4 = vrot.slane %v1104_v6, 1  ;;  %v1150_v11 = vrot.slane %v1149_v19, 2  ;;  %v1194_v49 = vadd.f32 %v1193_v58, %v1192_v15  ;;  %v1228_v17 = vadd.f32 %v1226_v28, %v1212_v55 }
 0x54b   : > { %1919 = vrcp.f32 (%p928_p8), %v1428_v34 }
 0x54c   : >> { %v1106_v27 = vadd.f32 %v1105_v4, %v1104_v6  ;;  %v1151_v7 = vadd.f32 %v1150_v11, %v1149_v19  ;;  %v1195_v52 = vrot.slane %v1194_v49, 4  ;;  %v1238_v29 = vmul.f32 %v2351_v3, %v1228_v17  ;;  %v1329_v60 = vpop.permute.xlu1 %1328 }
 0x54d   : >> { %v1259_v10 = vmul.f32 %v1904_v12, %v1228_v17  ;;  %v1333_v11 = vsel %vm640_vm6, %v1331_v51, 0.0 }
 0x54e   : >> { %v1390_v5 = vsel %vm1389_vm12, %v1059_v63, %v1106_v27  ;;  %v1152_v21 = vrot.slane %v1151_v7, 1  ;;  %v1196_v53 = vadd.f32 %v1195_v52, %v1194_v49  ;;  %v1240_v16 = vsel %vm640_vm6, %v1238_v29, 0.0 }
 0x54f   : >> { %v1241_v18 = vadd.f32 %v1240_v16, %v1239_v47  ;;  %v1275_v9 = vadd.f32 %v1273_v13, %v1259_v10 }
 0x550   : >> { %v1153_v20 = vadd.f32 %v1152_v21, %v1151_v7  ;;  %v1197_v3 = vrot.slane %v1196_v53, 2  ;;  %v1313_v22 = vpop.permute.xlu1 %1312  ;;  %v1376_v7 = vpop.permute.xlu0 %1375 }
 0x551   : >> { %v1242_v62 = vrot.slane %v1241_v18, 4  ;;  %v1285_v57 = vmul.f32 %v2415_v59, %v1275_v9  ;;  %v1306_v48 = vmul.f32 %v1906_v0, %v1275_v9  ;;  %v1320_v41 = vmul.f32 %v2379_v14, %v1313_v22 }
 0x552   : >> { %v1198_v43 = vadd.f32 %v1197_v3, %v1196_v53  ;;  %v1391_v56 = vsel %vm801_vm5, %v1390_v5, %v1153_v20 }
 0x553   : >> { %v1243_v39 = vadd.f32 %v1242_v62, %v1241_v18  ;;  %v1287_v55 = vsel %vm640_vm6, %v1285_v57, 0.0  ;;  %v1322_v6 = vadd.f32 %v1320_v41, %v1306_v48 }
 0x554   : >> { %v1199_v19 = vrot.slane %v1198_v43, 1  ;;  %v1288_v28 = vadd.f32 %v1287_v55, %v1286_v24  ;;  %v1909_v55 = vld [vmem:[%s2524_s12] sm:$0xff] (%p928_p8)  }
 0x555   : >> { %v1244_v59 = vrot.slane %v1243_v39, 2  ;;  %v1332_v15 = vmul.f32 %v1329_v60, %v1322_v6  ;;  %v1360_v58 = vpop.permute.xlu1 %1359  ;;  %v1353_v14 = vmul.f32 %v1908_v46, %v1322_v6  ;;  %1733 = vmatpush3.bf16.msra.mxu0 (%p928_p8), %v1909_v55  ;;  %v1910_v6 = vld [vmem:[%s2524_s12 + $0x8] sm:$0xff] (%p928_p8)  }
 0x556   : >> { %v1200_v30 = vadd.f32 %v1199_v19, %v1198_v43  ;;  %v1289_v12 = vrot.slane %v1288_v28, 4  ;;  %v1367_v4 = vmul.f32 %v2394_v50, %v1360_v58  ;;  %1734 = vmatprep.subr.bf16.mxu0 (%p928_p8), %v1986_v8 }
 0x557   : >> { %v1245_v49 = vadd.f32 %v1244_v59, %v1243_v39  ;;  %v1334_v23 = vsel %vm640_vm6, %v1332_v15, 0.0 }
 0x558   : >> { %v1393_v26 = vsel %vm1392_vm13, %v1391_v56, %v1200_v30  ;;  %v1290_v17 = vadd.f32 %v1289_v12, %v1288_v28  ;;  %v1335_v63 = vadd.f32 %v1334_v23, %v1333_v11  ;;  %v1369_v27 = vadd.f32 %v1367_v4, %v1353_v14  }
 0x559   : >> { %v1246_v52 = vrot.slane %v1245_v49, 1  ;;  %v1372_v29 = vpop.permute.xlu1 %1371  ;;  %1735 = vmatpush3.bf16.msra.mxu0 (%p928_p8), %v1910_v6  ;;  %v1418_v28 = vmul.f32 (%p928_p8), %v1661_v37, %v1409_v38 }
 0x55a   : >> { %v1291_v60 = vrot.slane %v1290_v17, 2  ;;  %v1336_v61 = vrot.slane %v1335_v63, 4  ;;  %v1378_v13 = vmul.f32 %v1372_v29, %v2403_v25  ;;  %v1379_v47 = vmul.f32 %v1376_v7, %v1369_v27  ;;  %1405 = vst.msk [vmem:[#allocation2 + $0x8] sm:$0xff] (%p928_p8), %vm640_vm6, %v1369_v27  ;;  %1736 = vmatprep.subr.bf16.mxu0 (%p928_p8), %v1986_v8 }
 0x55b   : >> { %v1247_v10 = vadd.f32 %v1246_v52, %v1245_v49 }
 0x55c   : >> { %v1292_v50 = vadd.f32 %v1291_v60, %v1290_v17  ;;  %v1337_v0 = vadd.f32 %v1336_v61, %v1335_v63  ;;  %v1380_v5 = vsel %vm640_vm6, %v1378_v13, 0.0  ;;  %v1381_v21 = vsel %vm640_vm6, %v1379_v47, 0.0 }
 0x55d   : >> { %v1395_v53 = vsel %vm1394_vm14, %v1393_v26, %v1247_v10  ;;  %v1382_v16 = vadd.f32 %v1381_v21, %v1380_v5  ;;  %1737 = vmatpush3.bf16.msra.mxu0 (%p928_p8), %v1911_v40 }
 0x55e   : >> { %v1293_v18 = vrot.slane %v1292_v50, 1  ;;  %v1338_v9 = vrot.slane %v1337_v0, 2  ;;  %1738 = vmatprep.subr.bf16.mxu0 (%p928_p8), %v1986_v8  ;;  %v1918_v8 = vpop.eup (%p928_p8), %1917 }
 0x55f   : >> { %v1383_v20 = vrot.slane %v1382_v16, 4  ;;  %v1920_v14 = vpop.eup (%p928_p8), %1919  ;;  %v1433_v30 = vmul.f32 (%p928_p8), %v1918_v8, %v2186_v45 }
 0x560   : >> { %v1294_v3 = vadd.f32 %v1293_v18, %v1292_v50  ;;  %v1339_v22 = vadd.f32 %v1338_v9, %v1337_v0  ;;  %v1434_v12 = vmul.f32 (%p928_p8), %v1920_v14, %v2192_v54 }
 0x561   : >> { %v1384_v62 = vadd.f32 %v1383_v20, %v1382_v16  ;;  %1739 = vmatpush3.bf16.msra.mxu0 (%p928_p8), %v1912_v42 }
 0x562   : >> { %v1340_v57 = vrot.slane %v1339_v22, 1  ;;  %v1397_v48 = vsel %vm1396_vm15, %v1395_v53, %v1294_v3 }
 0x563   : >> { %v1385_v41 = vrot.slane %v1384_v62, 2 }
 0x564   : >> { %v1341_v46 = vadd.f32 %v1340_v57, %v1339_v22 }
 0x565   : >> { %v1386_v24 = vadd.f32 %v1385_v41, %v1384_v62  ;;  %v2526_v41 = vmov %v1369_v27 }
 0x566   : >> { %v1399_v43 = vsel %vm1398_vm0, %v1397_v48, %v1341_v46  ;;  %930 = sbr.rel (!%p928_p8) target bundleno = 924 (0x39c), region = 116 }
 0x567   : >> { %v1387_v56 = vrot.slane %v1386_v24, 1 }
 0x569   : >> { %v1388_v51 = vadd.f32 %v1387_v56, %v1386_v24 }
 0x56b   : >> { %v1401_v39 = vsel %vm1400_vm1, %v1399_v43, %v1388_v51 }
 0x56c   : >> { %1403 = vst.msk [vmem:[%s1402_s22] sm:$0xff] %vm640_vm6, %v1401_v39  ;;  %v2527_v39 = vmov %v2403_v25  ;;  %v1417_v25 = vmul.f32 (%p928_p8), %v1661_v37, %v1408_v35 }
 0x573   : > { %v1406_v19 = vld [vmem:[#allocation7] sm:$0xff]  ;;  %v1407_v59 = vld [vmem:[#allocation7 + $0x8] sm:$0xff] }
 0x574   : > { %v1419_v15 = vadd.f32 %v1417_v25, %v1406_v19  ;;  %v1420_v58 = vadd.f32 %v1418_v28, %v1407_v59 }
 0x576   : > { %v1435_v4 = vmul.f32 %v1433_v30, %v1419_v15  ;;  %v1436_v11 = vmul.f32 %v1434_v12, %v1420_v58 }
 0x578   : > { %v1437_v49 = vpack.c.bf16 %v1436_v11, %v1435_v4 }
 0x57a   : > { %1741 = vmatmul.mubr.msk.bf16.vlgmr.msra.gmra.mrb[0].mxu0 %vm640_vm6, %v1437_v49 }
 0x64d   : > { %v1507_v23 = vpop.f32.mrb[0].mxu0 }
 0x64e   : > { %v1514_v26 = vadd.f32 %v1507_v23, %v2104_v1  ;;  %v1742_v17 = vpop.f32.mrb[1].mxu0 }
 0x64f   : > { %v1510_v63 = vpop.f32.mrb[2].mxu0 }
 0x650   : > { %1516 = vst.msk [vmem:[%s2102_s24] sm:$0xff] %vm494_vm2, %v1514_v26  ;;  %v1515_v27 = vadd.f32 %v1510_v63, %v2106_v2  ;;  %v1743_v7 = vpop.f32.mrb[3].mxu0 }
 0x652   : > { %1517 = vst.msk [vmem:[%s2102_s24 + $0x8] sm:$0xff] %vm494_vm2, %v1515_v27 }
 0x653 PF: > { %s23_s29 = sadd.s32 1, %s1971_s29   ;;  %s2528_s25 = smov %s1963_s27 }
 0x654   : > { %p20_p9 = scmp.ge.s32.totalorder %s23_s29, 6   ;;  %s2529_s26 = smov %s1967_s28 }
 0x655   : > { %s2530_s27 = smov %s2533_s30  ;;  %s2531_s28 = smov %s2537_s14 }
 0x656   :  { %22 = sbr.rel (!%p20_p9) target bundleno = 3 (0x3), region = 127 }

</bundles_post_ra>
